<compile_context>
chip_gen: v7x
topology: tpu7x:2x2x1
jax: 0.10.0
libtpu: 0.0.40
codegen_flags: <defaults>
</compile_context>

<pallas_src>
import math
import functools

import jax
import jax.numpy as jnp
from jax.experimental import pallas as pl
from jax.experimental.pallas import tpu as pltpu

_VMEM_LIMIT = 64 * 1024 * 1024


# ------------------------------- helpers ------------------------------------ #

def _pick_tile(dim, target, align):
    """Largest `align`-aligned divisor of `dim` that is <= target (else full dim)."""
    if dim <= target:
        return dim
    if dim % align:
        return dim          # keep the full dim; always satisfies the (8,128) rule
    t = min(target, dim)
    t -= t % align
    while t >= align:
        if dim % t == 0:
            return t
        t -= align
    return dim


def _layernorm(y, gamma, beta):
    # eps=1e-5, biased variance (PyTorch default). f32 math.
    mean = jnp.mean(y, axis=-1, keepdims=True)
    var = jnp.mean(jnp.square(y - mean), axis=-1, keepdims=True)
    return (y - mean) * jax.lax.rsqrt(var + 1e-5) * gamma + beta


# ----------------------------- Pallas kernels ------------------------------- #

def _attn_block_kernel(x_ref, mask_ref, wqkv_ref, bqkv_ref, wo_ref, bo_ref,
                       g_ref, beta_ref, o_ref, *, nhead):
    """Fused: QKV proj -> causal MHA (heads batched) -> out proj -> +res -> LN1.

    One batch element per grid step; blocks are lane-dense (S, E) bf16.
    """
    x = x_ref[0]                                   # (S, E) bf16
    S, E = x.shape
    Dh = E // nhead

    # Fused QKV projection (bf16 weights pre-transposed to (E, 3E), MXU-native).
    # The 1/sqrt(Dh) attention scale is already folded into the Q columns.
    qkv = jnp.dot(x, wqkv_ref[...], preferred_element_type=jnp.float32) + bqkv_ref[...]
    q = qkv[:, :E].astype(jnp.bfloat16)            # E % 128 == 0 => lane-aligned slices
    k = qkv[:, E:2 * E].astype(jnp.bfloat16)
    v = qkv[:, 2 * E:].astype(jnp.bfloat16)

    # Batch all heads into single contractions: (H, S, Dh) stacks built from
    # static lane slices (cheap), fed to one batched MXU matmul each.
    q3 = jnp.stack([q[:, h * Dh:(h + 1) * Dh] for h in range(nhead)], axis=0)
    k3 = jnp.stack([k[:, h * Dh:(h + 1) * Dh] for h in range(nhead)], axis=0)
    v3 = jnp.stack([v[:, h * Dh:(h + 1) * Dh] for h in range(nhead)], axis=0)

    s = jnp.einsum('hqd,hkd->hqk', q3, k3,
                   preferred_element_type=jnp.float32)          # (H, S, S) f32
    s = s + mask_ref[...]                # precomputed causal additive mask (S, S)
    s = s - jnp.max(s, axis=-1, keepdims=True)
    p = jnp.exp(s)
    # approx reciprocal goes to the EUP slot; tiny relative error vs exact softmax.
    p = p * pl.reciprocal(jnp.sum(p, axis=-1, keepdims=True), approx=True)

    ctx = jnp.einsum('hqk,hkd->hqd', p.astype(jnp.bfloat16), v3,
                     preferred_element_type=jnp.float32)        # (H, S, Dh) f32
    ctx2d = jnp.concatenate([ctx[h] for h in range(nhead)], axis=-1)   # (S, E)

    attn = jnp.dot(ctx2d.astype(jnp.bfloat16), wo_ref[...],
                   preferred_element_type=jnp.float32) + bo_ref[...]

    y = x.astype(jnp.float32) + attn               # residual + LayerNorm1 in f32
    o_ref[0] = _layernorm(y, g_ref[...], beta_ref[...]).astype(o_ref.dtype)


def _ffn_block_kernel(x_ref, w1_ref, b1_ref, w2_ref, b2_ref, g_ref, beta_ref,
                      o_ref, acc_ref):
    """Fused FFN with d_hid tiled as a reduction axis:
       acc += relu(x @ w1[:, j] + b1[j]) @ w2[j, :]; finalize: +b2, +res, LN2."""
    j = pl.program_id(1)

    @pl.when(j == 0)
    def _():
        acc_ref[...] = jnp.zeros_like(acc_ref)

    x = x_ref[...]                                 # (tm, E) bf16
    h = jnp.dot(x, w1_ref[...], preferred_element_type=jnp.float32) + b1_ref[...]
    h = jnp.maximum(h, 0.0).astype(jnp.bfloat16)   # ReLU is elementwise per d_hid chunk
    acc_ref[...] += jnp.dot(h, w2_ref[...], preferred_element_type=jnp.float32)

    @pl.when(j == pl.num_programs(1) - 1)
    def _():
        y = x.astype(jnp.float32) + acc_ref[...] + b2_ref[...]
        o_ref[...] = _layernorm(y, g_ref[...], beta_ref[...]).astype(o_ref.dtype)


def _matmul_bias_kernel(x_ref, w_ref, b_ref, o_ref, acc_ref):
    """Tiled y = x @ W + b with f32 accumulator over the K grid axis (bf16 MXU)."""
    @pl.when(pl.program_id(2) == 0)
    def _():
        acc_ref[...] = jnp.zeros_like(acc_ref)

    acc_ref[...] += jnp.dot(x_ref[...], w_ref[...],
                            preferred_element_type=jnp.float32)

    @pl.when(pl.program_id(2) == pl.num_programs(2) - 1)
    def _():
        o_ref[...] = (acc_ref[...] + b_ref[...]).astype(o_ref.dtype)


# ------------------------------ kernel wrappers ------------------------------ #

def attention_block(x, mask, lp, nhead):
    """x: (N, S, E) bf16 -> LayerNorm1(x + MHA(x)) : (N, S, E) bf16."""
    N, S, E = x.shape
    kern = functools.partial(_attn_block_kernel, nhead=nhead)
    act_spec = pl.BlockSpec((1, S, E), lambda b: (b, 0, 0))

    def full(a):
        return pl.BlockSpec(a.shape, lambda b: (0,) * a.ndim)

    # TODO(synk): for very long S (v7x 64 MiB VMEM), switch to a flash-style
    # query/KV-tiled grid instead of one (S, E) block with full (S, S) scores.
    return pl.pallas_call(
        kern,
        out_shape=jax.ShapeDtypeStruct((N, S, E), jnp.bfloat16),
        grid=(N,),
        in_specs=[act_spec, full(mask),
                  full(lp["wqkv"]), full(lp["bqkv"]),
                  full(lp["wo"]), full(lp["bo"]),
                  full(lp["ln1_g"]), full(lp["ln1_b"])],
        out_specs=act_spec,
        compiler_params=pltpu.CompilerParams(
            dimension_semantics=("parallel",),
            vmem_limit_bytes=_VMEM_LIMIT),
    )(x, mask, lp["wqkv"], lp["bqkv"], lp["wo"], lp["bo"], lp["ln1_g"], lp["ln1_b"])


def ffn_block(x2, lp, tm_target=256, tdh_target=512):
    """x2: (M, E) bf16 -> LayerNorm2(x2 + FFN(x2)) : (M, E) bf16."""
    M, E = x2.shape
    d_hid = lp["w1"].shape[1]
    tm = _pick_tile(M, tm_target, 8)
    tdh = _pick_tile(d_hid, tdh_target, 128)       # d_hid reduction tile

    def full(a):
        return pl.BlockSpec(a.shape, lambda i, j: (0,) * a.ndim)

    return pl.pallas_call(
        _ffn_block_kernel,
        out_shape=jax.ShapeDtypeStruct((M, E), jnp.bfloat16),
        grid=(M // tm, d_hid // tdh),
        in_specs=[pl.BlockSpec((tm, E), lambda i, j: (i, 0)),
                  pl.BlockSpec((E, tdh), lambda i, j: (0, j)),     # w1 chunk
                  pl.BlockSpec((1, tdh), lambda i, j: (0, j)),     # b1 chunk
                  pl.BlockSpec((tdh, E), lambda i, j: (j, 0)),     # w2 chunk
                  full(lp["b2"]), full(lp["ln2_g"]), full(lp["ln2_b"])],
        out_specs=pl.BlockSpec((tm, E), lambda i, j: (i, 0)),
        scratch_shapes=[pltpu.VMEM((tm, E), jnp.float32)],
        compiler_params=pltpu.CompilerParams(
            dimension_semantics=("parallel", "arbitrary"),
            vmem_limit_bytes=_VMEM_LIMIT),
    )(x2, lp["w1"], lp["b1"], lp["w2"], lp["b2"], lp["ln2_g"], lp["ln2_b"])


def pallas_linear_tiled(x, w, b, tm_target=256, tn_target=512, tk_target=512):
    """Tiled, pipelined y = x @ W + b.  W is (K, N) bf16 (pre-transposed), b is (1, N).

    Tile targets are multiples of 256 to feed the v6e/v7x 256x256 MXU fully
    (128-multiples are enough on v5e; _pick_tile keeps 128 alignment)."""
    M, K = x.shape
    Kw, Nf = w.shape
    assert Kw == K
    tm = _pick_tile(M, tm_target, 8)
    tn = _pick_tile(Nf, tn_target, 128)
    tk = _pick_tile(K, tk_target, 128)
    grid = (M // tm, Nf // tn, K // tk)
    return pl.pallas_call(
        _matmul_bias_kernel,
        out_shape=jax.ShapeDtypeStruct((M, Nf), jnp.float32),
        grid=grid,
        in_specs=[pl.BlockSpec((tm, tk), lambda i, j, k: (i, k)),
                  pl.BlockSpec((tk, tn), lambda i, j, k: (k, j)),
                  pl.BlockSpec((1, tn), lambda i, j, k: (0, j))],
        out_specs=pl.BlockSpec((tm, tn), lambda i, j, k: (i, j)),
        scratch_shapes=[pltpu.VMEM((tm, tn), jnp.float32)],
        compiler_params=pltpu.CompilerParams(
            dimension_semantics=("parallel", "parallel", "arbitrary"),
            vmem_limit_bytes=_VMEM_LIMIT),
    )(x, w, b)


# ------------------------- model (glue around kernels) ----------------------- #

def generator_forward(src, params, nhead):
    """src: (S, N) int32 token ids (batch_first=False, like the reference)."""
    S, N = src.shape
    E = params["embedding"].shape[1]
    V = params["final_w"].shape[1]

    # Embedding lookup (gather stays in JAX glue), straight into (N, S, E) layout.
    x = params["embedding"][src.T].astype(jnp.float32) * math.sqrt(E)   # (N, S, E) f32

    # Positional encoding — reproduces pe[:, :x.size(1)] from the reference,
    # which slices along the *batch* axis of (S, N, E) inputs:
    # original: x[s, n, :] += pe[0, n, :]  ->  here (N,S,E): x[n, s, :] += pe[0, n, :]
    x = x + params["pe"][0, :N][:, None, :]
    x = x.astype(jnp.bfloat16)

    # Precompute the causal additive mask once (matches
    # nn.Transformer.generate_square_subsequent_mask); constant index_map =>
    # DMA'd into VMEM once, not regenerated per grid step.
    idx = jnp.arange(S)
    mask = jnp.where(idx[None, :] <= idx[:, None], 0.0, -jnp.inf).astype(jnp.float32)

    for lp in params["layers"]:
        x = attention_block(x, mask, lp, nhead)                   # attn + LN1 (fused)
        x = ffn_block(x.reshape(N * S, E), lp).reshape(N, S, E)   # FFN + LN2 (fused)

    # Transpose the SMALL activation tensor to (S, N, E) (E << V) so the big
    # logits land directly in (S, N, V) — no full-HBM transpose of the logits.
    x_sn = x.transpose(1, 0, 2).reshape(S * N, E)
    logits = pallas_linear_tiled(x_sn, params["final_w"], params["final_b"])
    return logits.reshape(S, N, V)


# ------------------------------ parameter init ------------------------------- #

def init_params(key, vocab_size, max_seq_len, emsize, d_hid, nhead, nlayers):
    # Matmul weights live in bf16, in kernel-friendly (in, out) layout; biases
    # and LayerNorm params stay f32 as (1, out).
    def uni(k, shape, scale=0.1, dtype=jnp.bfloat16):
        return jax.random.uniform(k, shape, jnp.float32, -scale, scale).astype(dtype)

    keys = iter(jax.random.split(key, 4 + 8 * nlayers))

    # sinusoidal positional-encoding buffer (f32)
    pos = jnp.arange(max_seq_len, dtype=jnp.float32)[:, None]
    div = jnp.exp(jnp.arange(0, emsize, 2, dtype=jnp.float32) *
                  (-math.log(10000.0) / emsize))
    pe = jnp.zeros((max_seq_len, emsize), jnp.float32)
    pe = pe.at[:, 0::2].set(jnp.sin(pos * div))
    pe = pe.at[:, 1::2].set(jnp.cos(pos * div))

    params = {
        "embedding": uni(next(keys), (vocab_size, emsize)),     # uniform(-0.1, 0.1), bf16
        "pe": pe[None],                                         # (1, max_seq_len, E) f32
        "final_w": uni(next(keys), (emsize, vocab_size)),       # (E, V) pre-transposed bf16
        "final_b": jnp.zeros((1, vocab_size), jnp.float32),
        "layers": [],
    }
    head_scale = 1.0 / math.sqrt(emsize // nhead)
    for _ in range(nlayers):
        # Fold the 1/sqrt(Dh) attention scale into the Q projection (zero runtime cost).
        wqkv = jax.random.uniform(next(keys), (emsize, 3 * emsize), jnp.float32, -0.1, 0.1)
        wqkv = wqkv.at[:, :emsize].multiply(head_scale)
        bqkv = jnp.zeros((1, 3 * emsize), jnp.float32)           # scale on zero bias is a no-op
        lp = {
            "wqkv": wqkv.astype(jnp.bfloat16),                   # (E, 3E) bf16
            "bqkv": bqkv,
            "wo": uni(next(keys), (emsize, emsize)),             # (E, E) bf16
            "bo": jnp.zeros((1, emsize), jnp.float32),
            "w1": uni(next(keys), (emsize, d_hid)),              # (E, d_hid) bf16
            "b1": uni(next(keys), (1, d_hid), dtype=jnp.float32),
            "w2": uni(next(keys), (d_hid, emsize)),              # (d_hid, E) bf16
            "b2": uni(next(keys), (1, emsize), dtype=jnp.float32),
            "ln1_g": jnp.ones((1, emsize), jnp.float32),
            "ln1_b": jnp.zeros((1, emsize), jnp.float32),
            "ln2_g": jnp.ones((1, emsize), jnp.float32),
            "ln2_b": jnp.zeros((1, emsize), jnp.float32),
        }
        params["layers"].append(lp)
    return params


# ----------------------------------- main ------------------------------------ #

if __name__ == "__main__":
    # E chosen as a multiple of 128 (and Dh = 128) so all head slices are
    # lane-aligned — matches the perf guidance; shapes kept small otherwise.
    vocab_size, max_seq_len = 64, 16
    emsize, d_hid, nhead, nlayers = 256, 512, 2, 2
    S, N = 8, 2                                   # seq len, batch

    key = jax.random.PRNGKey(0)
    pkey, skey = jax.random.split(key)
    params = init_params(pkey, vocab_size, max_seq_len, emsize, d_hid, nhead, nlayers)
    src = jax.random.randint(skey, (S, N), 0, vocab_size, dtype=jnp.int32)

    fwd = jax.jit(generator_forward, static_argnums=(2,))
    out = jax.block_until_ready(fwd(src, params, nhead))
    assert out.shape == (S, N, vocab_size), out.shape
    assert jnp.all(jnp.isfinite(out))
    print("KERNEL_OK")
</pallas_src>

<mosaic_0001>
module attributes {stable_mosaic.version = 11 : i64} {
  func.func @_ffn_block_kernel(%arg0: i32, %arg1: i32, %arg2: memref<16x256xbf16, #tpu.memory_space<vmem>>, %arg3: memref<256x512xbf16, #tpu.memory_space<vmem>>, %arg4: memref<1x512xf32, #tpu.memory_space<vmem>>, %arg5: memref<512x256xbf16, #tpu.memory_space<vmem>>, %arg6: memref<1x256xf32, #tpu.memory_space<vmem>>, %arg7: memref<1x256xf32, #tpu.memory_space<vmem>>, %arg8: memref<1x256xf32, #tpu.memory_space<vmem>>, %arg9: memref<16x256xbf16, #tpu.memory_space<vmem>>, %arg10: memref<16x256xf32, #tpu.memory_space<vmem>>) attributes {dimension_semantics = [#tpu.dimension_semantics<parallel>, #tpu.dimension_semantics<arbitrary>], iteration_bounds = array<i64: 1, 1>, scalar_prefetch = 0 : i64, scratch_operands = 1 : i64, tpu.core_type = #tpu.core_type<tc>, window_params = [{transform_indices = @transform_0, window_bounds = array<i64: 16, 256>}, {transform_indices = @transform_1, window_bounds = array<i64: 256, 512>}, {transform_indices = @transform_2, window_bounds = array<i64: 1, 512>}, {transform_indices = @transform_3, window_bounds = array<i64: 512, 256>}, {pipeline_mode = #tpu.pipeline_mode<synchronous>, transform_indices = @transform_4, window_bounds = array<i64: 1, 256>}, {pipeline_mode = #tpu.pipeline_mode<synchronous>, transform_indices = @transform_5, window_bounds = array<i64: 1, 256>}, {pipeline_mode = #tpu.pipeline_mode<synchronous>, transform_indices = @transform_6, window_bounds = array<i64: 1, 256>}, {transform_indices = @transform_7, window_bounds = array<i64: 16, 256>}]} {
    %c0_i32 = arith.constant 0 : i32
    %0 = arith.cmpi eq, %arg1, %c0_i32 : i32
    %1 = arith.extui %0 : i1 to i32
    %c0_i32_0 = arith.constant 0 : i32
    %2 = arith.cmpi ne, %1, %c0_i32_0 : i32
    scf.if %2 {
      %cst_16 = arith.constant 0.000000e+00 : f32
      %20 = vector.broadcast %cst_16 : f32 to vector<16x256xf32>
      %c0_17 = arith.constant 0 : index
      %c0_18 = arith.constant 0 : index
      %21 = vector.load %arg10[%c0_17, %c0_18] : memref<16x256xf32, #tpu.memory_space<vmem>>, vector<16x256xf32>
      tpu.vector_store %arg10[%c0_17, %c0_18], %20 {strides = array<i32>} : memref<16x256xf32, #tpu.memory_space<vmem>>, vector<16x256xf32>,
    } else {
    }
    %c0 = arith.constant 0 : index
    %c0_1 = arith.constant 0 : index
    %3 = vector.load %arg2[%c0, %c0_1] : memref<16x256xbf16, #tpu.memory_space<vmem>>, vector<16x256xbf16>
    %c0_2 = arith.constant 0 : index
    %c0_3 = arith.constant 0 : index
    %4 = vector.load %arg3[%c0_2, %c0_3] : memref<256x512xbf16, #tpu.memory_space<vmem>>, vector<256x512xbf16>
    %cst = arith.constant dense<0.000000e+00> : vector<16x512xf32>
    %5 = tpu.matmul %3, %4, %cst {dimension_numbers = #tpu.dot_dimension_numbers<[1], [0], [0], [1], [0, 0, 1, 1], [], []>} : vector<16x256xbf16>, vector<256x512xbf16>, vector<16x512xf32> -> vector<16x512xf32>
    %c0_4 = arith.constant 0 : index
    %c0_5 = arith.constant 0 : index
    %6 = vector.load %arg4[%c0_4, %c0_5] : memref<1x512xf32, #tpu.memory_space<vmem>>, vector<1x512xf32>
    %7 = vector.broadcast %6 : vector<1x512xf32> to vector<16x512xf32>
    %8 = arith.addf %5, %7 : vector<16x512xf32>
    %cst_6 = arith.constant 0.000000e+00 : f32
    %9 = vector.broadcast %cst_6 : f32 to vector<16x512xf32>
    %10 = arith.maximumf %8, %9 : vector<16x512xf32>
    %11 = arith.truncf %10 : vector<16x512xf32> to vector<16x512xbf16>
    %c0_7 = arith.constant 0 : index
    %c0_8 = arith.constant 0 : index
    %12 = vector.load %arg10[%c0_7, %c0_8] : memref<16x256xf32, #tpu.memory_space<vmem>>, vector<16x256xf32>
    %c0_9 = arith.constant 0 : index
    %c0_10 = arith.constant 0 : index
    %13 = vector.load %arg5[%c0_9, %c0_10] : memref<512x256xbf16, #tpu.memory_space<vmem>>, vector<512x256xbf16>
    %cst_11 = arith.constant dense<0.000000e+00> : vector<16x256xf32>
    %14 = tpu.matmul %11, %13, %cst_11 {dimension_numbers = #tpu.dot_dimension_numbers<[1], [0], [0], [1], [0, 0, 1, 1], [], []>} : vector<16x512xbf16>, vector<512x256xbf16>, vector<16x256xf32> -> vector<16x256xf32>
    %15 = arith.addf %12, %14 : vector<16x256xf32>
    %c0_12 = arith.constant 0 : index
    %c0_13 = arith.constant 0 : index
    %16 = vector.load %arg10[%c0_12, %c0_13] : memref<16x256xf32, #tpu.memory_space<vmem>>, vector<16x256xf32>
    tpu.vector_store %arg10[%c0_12, %c0_13], %15 {strides = array<i32>} : memref<16x256xf32, #tpu.memory_space<vmem>>, vector<16x256xf32>,
    %c0_i32_14 = arith.constant 0 : i32
    %17 = arith.cmpi eq, %arg1, %c0_i32_14 : i32
    %18 = arith.extui %17 : i1 to i32
    %c0_i32_15 = arith.constant 0 : i32
    %19 = arith.cmpi ne, %18, %c0_i32_15 : i32
    scf.if %19 {
      %20 = arith.extf %3 : vector<16x256xbf16> to vector<16x256xf32>
      %c0_16 = arith.constant 0 : index
      %c0_17 = arith.constant 0 : index
      %21 = vector.load %arg10[%c0_16, %c0_17] : memref<16x256xf32, #tpu.memory_space<vmem>>, vector<16x256xf32>
      %22 = arith.addf %20, %21 : vector<16x256xf32>
      %c0_18 = arith.constant 0 : index
      %c0_19 = arith.constant 0 : index
      %23 = vector.load %arg6[%c0_18, %c0_19] : memref<1x256xf32, #tpu.memory_space<vmem>>, vector<1x256xf32>
      %24 = vector.broadcast %23 : vector<1x256xf32> to vector<16x256xf32>
      %25 = arith.addf %22, %24 : vector<16x256xf32>
      %c0_20 = arith.constant 0 : index
      %c0_21 = arith.constant 0 : index
      %26 = vector.load %arg7[%c0_20, %c0_21] : memref<1x256xf32, #tpu.memory_space<vmem>>, vector<1x256xf32>
      %c0_22 = arith.constant 0 : index
      %c0_23 = arith.constant 0 : index
      %27 = vector.load %arg8[%c0_22, %c0_23] : memref<1x256xf32, #tpu.memory_space<vmem>>, vector<1x256xf32>
      %cst_24 = arith.constant dense<0.000000e+00> : vector<16xf32>
      %28 = vector.multi_reduction <add>, %25, %cst_24 [1] : vector<16x256xf32> to vector<16xf32>
      %29 = vector.shape_cast %28 : vector<16xf32> to vector<16x1xf32>
      %cst_25 = arith.constant 2.560000e+02 : f32
      %30 = vector.broadcast %cst_25 : f32 to vector<16x1xf32>
      %31 = arith.divf %29, %30 : vector<16x1xf32>
      %32 = vector.broadcast %31 : vector<16x1xf32> to vector<16x256xf32>
      %33 = arith.subf %25, %32 : vector<16x256xf32>
      %34 = arith.mulf %33, %33 : vector<16x256xf32>
      %cst_26 = arith.constant dense<0.000000e+00> : vector<16xf32>
      %35 = vector.multi_reduction <add>, %34, %cst_26 [1] : vector<16x256xf32> to vector<16xf32>
      %36 = vector.shape_cast %35 : vector<16xf32> to vector<16x1xf32>
      %cst_27 = arith.constant 2.560000e+02 : f32
      %37 = vector.broadcast %cst_27 : f32 to vector<16x1xf32>
      %38 = arith.divf %36, %37 : vector<16x1xf32>
      %39 = vector.broadcast %31 : vector<16x1xf32> to vector<16x256xf32>
      %40 = arith.subf %25, %39 : vector<16x256xf32>
      %cst_28 = arith.constant 9.99999974E-6 : f32
      %41 = vector.broadcast %cst_28 : f32 to vector<16x1xf32>
      %42 = arith.addf %38, %41 : vector<16x1xf32>
      %43 = math.rsqrt %42 : vector<16x1xf32>
      %44 = vector.broadcast %43 : vector<16x1xf32> to vector<16x256xf32>
      %45 = arith.mulf %40, %44 : vector<16x256xf32>
      %46 = vector.broadcast %26 : vector<1x256xf32> to vector<16x256xf32>
      %47 = arith.mulf %45, %46 : vector<16x256xf32>
      %48 = vector.broadcast %27 : vector<1x256xf32> to vector<16x256xf32>
      %49 = arith.addf %47, %48 : vector<16x256xf32>
      %50 = arith.truncf %49 : vector<16x256xf32> to vector<16x256xbf16>
      %c0_29 = arith.constant 0 : index
      %c0_30 = arith.constant 0 : index
      %51 = vector.load %arg9[%c0_29, %c0_30] : memref<16x256xbf16, #tpu.memory_space<vmem>>, vector<16x256xbf16>
      tpu.vector_store %arg9[%c0_29, %c0_30], %50 {strides = array<i32>} : memref<16x256xbf16, #tpu.memory_space<vmem>>, vector<16x256xbf16>,
    } else {
    }
    return
  }
  func.func @transform_0(%arg0: i32, %arg1: i32) -> (i32, i32) {
    %c0_i32 = arith.constant 0 : i32
    %c0_i32_0 = arith.constant 0 : i32
    return %arg0, %c0_i32 : i32, i32
  }
  func.func @transform_1(%arg0: i32, %arg1: i32) -> (i32, i32) {
    %c0_i32 = arith.constant 0 : i32
    %c0_i32_0 = arith.constant 0 : i32
    return %c0_i32, %arg1 : i32, i32
  }
  func.func @transform_2(%arg0: i32, %arg1: i32) -> (i32, i32) {
    %c0_i32 = arith.constant 0 : i32
    %c0_i32_0 = arith.constant 0 : i32
    return %c0_i32, %arg1 : i32, i32
  }
  func.func @transform_3(%arg0: i32, %arg1: i32) -> (i32, i32) {
    %c0_i32 = arith.constant 0 : i32
    %c0_i32_0 = arith.constant 0 : i32
    return %arg1, %c0_i32 : i32, i32
  }
  func.func @transform_4(%arg0: i32, %arg1: i32) -> (i32, i32) {
    %c0_i32 = arith.constant 0 : i32
    %c0_i32_0 = arith.constant 0 : i32
    %c0_i32_1 = arith.constant 0 : i32
    return %c0_i32, %c0_i32_0 : i32, i32
  }
  func.func @transform_5(%arg0: i32, %arg1: i32) -> (i32, i32) {
    %c0_i32 = arith.constant 0 : i32
    %c0_i32_0 = arith.constant 0 : i32
    %c0_i32_1 = arith.constant 0 : i32
    return %c0_i32, %c0_i32_0 : i32, i32
  }
  func.func @transform_6(%arg0: i32, %arg1: i32) -> (i32, i32) {
    %c0_i32 = arith.constant 0 : i32
    %c0_i32_0 = arith.constant 0 : i32
    %c0_i32_1 = arith.constant 0 : i32
    return %c0_i32, %c0_i32_0 : i32, i32
  }
  func.func @transform_7(%arg0: i32, %arg1: i32) -> (i32, i32) {
    %c0_i32 = arith.constant 0 : i32
    %c0_i32_0 = arith.constant 0 : i32
    return %arg0, %c0_i32 : i32, i32
  }
}

module attributes {stable_mosaic.version = 11 : i64} {
  func.func @_matmul_bias_kernel(%arg0: i32, %arg1: i32, %arg2: i32, %arg3: memref<16x256xbf16, #tpu.memory_space<vmem>>, %arg4: memref<256x64xbf16, #tpu.memory_space<vmem>>, %arg5: memref<1x64xf32, #tpu.memory_space<vmem>>, %arg6: memref<16x64xf32, #tpu.memory_space<vmem>>, %arg7: memref<16x64xf32, #tpu.memory_space<vmem>>) attributes {dimension_semantics = [#tpu.dimension_semantics<parallel>, #tpu.dimension_semantics<parallel>, #tpu.dimension_semantics<arbitrary>], iteration_bounds = array<i64: 1, 1, 1>, scalar_prefetch = 0 : i64, scratch_operands = 1 : i64, tpu.core_type = #tpu.core_type<tc>, window_params = [{transform_indices = @transform_0, window_bounds = array<i64: 16, 256>}, {transform_indices = @transform_1, window_bounds = array<i64: 256, 64>}, {transform_indices = @transform_2, window_bounds = array<i64: 1, 64>}, {transform_indices = @transform_3, window_bounds = array<i64: 16, 64>}]} {
    %c0_i32 = arith.constant 0 : i32
    %0 = arith.cmpi eq, %arg2, %c0_i32 : i32
    %1 = arith.extui %0 : i1 to i32
    %c0_i32_0 = arith.constant 0 : i32
    %2 = arith.cmpi ne, %1, %c0_i32_0 : i32
    scf.if %2 {
      %cst_10 = arith.constant 0.000000e+00 : f32
      %12 = vector.broadcast %cst_10 : f32 to vector<16x64xf32>
      %c0_11 = arith.constant 0 : index
      %c0_12 = arith.constant 0 : index
      %13 = vector.load %arg7[%c0_11, %c0_12] : memref<16x64xf32, #tpu.memory_space<vmem>>, vector<16x64xf32>
      tpu.vector_store %arg7[%c0_11, %c0_12], %12 {strides = array<i32>} : memref<16x64xf32, #tpu.memory_space<vmem>>, vector<16x64xf32>,
    } else {
    }
    %c0 = arith.constant 0 : index
    %c0_1 = arith.constant 0 : index
    %3 = vector.load %arg7[%c0, %c0_1] : memref<16x64xf32, #tpu.memory_space<vmem>>, vector<16x64xf32>
    %c0_2 = arith.constant 0 : index
    %c0_3 = arith.constant 0 : index
    %4 = vector.load %arg3[%c0_2, %c0_3] : memref<16x256xbf16, #tpu.memory_space<vmem>>, vector<16x256xbf16>
    %c0_4 = arith.constant 0 : index
    %c0_5 = arith.constant 0 : index
    %5 = vector.load %arg4[%c0_4, %c0_5] : memref<256x64xbf16, #tpu.memory_space<vmem>>, vector<256x64xbf16>
    %cst = arith.constant dense<0.000000e+00> : vector<16x64xf32>
    %6 = tpu.matmul %4, %5, %cst {dimension_numbers = #tpu.dot_dimension_numbers<[1], [0], [0], [1], [0, 0, 1, 1], [], []>} : vector<16x256xbf16>, vector<256x64xbf16>, vector<16x64xf32> -> vector<16x64xf32>
    %7 = arith.addf %3, %6 : vector<16x64xf32>
    %c0_6 = arith.constant 0 : index
    %c0_7 = arith.constant 0 : index
    %8 = vector.load %arg7[%c0_6, %c0_7] : memref<16x64xf32, #tpu.memory_space<vmem>>, vector<16x64xf32>
    tpu.vector_store %arg7[%c0_6, %c0_7], %7 {strides = array<i32>} : memref<16x64xf32, #tpu.memory_space<vmem>>, vector<16x64xf32>,
    %c0_i32_8 = arith.constant 0 : i32
    %9 = arith.cmpi eq, %arg2, %c0_i32_8 : i32
    %10 = arith.extui %9 : i1 to i32
    %c0_i32_9 = arith.constant 0 : i32
    %11 = arith.cmpi ne, %10, %c0_i32_9 : i32
    scf.if %11 {
      %c0_10 = arith.constant 0 : index
      %c0_11 = arith.constant 0 : index
      %12 = vector.load %arg7[%c0_10, %c0_11] : memref<16x64xf32, #tpu.memory_space<vmem>>, vector<16x64xf32>
      %c0_12 = arith.constant 0 : index
      %c0_13 = arith.constant 0 : index
      %13 = vector.load %arg5[%c0_12, %c0_13] : memref<1x64xf32, #tpu.memory_space<vmem>>, vector<1x64xf32>
      %14 = vector.broadcast %13 : vector<1x64xf32> to vector<16x64xf32>
      %15 = arith.addf %12, %14 : vector<16x64xf32>
      %c0_14 = arith.constant 0 : index
      %c0_15 = arith.constant 0 : index
      %16 = vector.load %arg6[%c0_14, %c0_15] : memref<16x64xf32, #tpu.memory_space<vmem>>, vector<16x64xf32>
      tpu.vector_store %arg6[%c0_14, %c0_15], %15 {strides = array<i32>} : memref<16x64xf32, #tpu.memory_space<vmem>>, vector<16x64xf32>,
    } else {
    }
    return
  }
  func.func @transform_0(%arg0: i32, %arg1: i32, %arg2: i32) -> (i32, i32) {
    %c0_i32 = arith.constant 0 : i32
    return %arg0, %arg2 : i32, i32
  }
  func.func @transform_1(%arg0: i32, %arg1: i32, %arg2: i32) -> (i32, i32) {
    %c0_i32 = arith.constant 0 : i32
    return %arg2, %arg1 : i32, i32
  }
  func.func @transform_2(%arg0: i32, %arg1: i32, %arg2: i32) -> (i32, i32) {
    %c0_i32 = arith.constant 0 : i32
    %c0_i32_0 = arith.constant 0 : i32
    return %c0_i32, %arg1 : i32, i32
  }
  func.func @transform_3(%arg0: i32, %arg1: i32, %arg2: i32) -> (i32, i32) {
    %c0_i32 = arith.constant 0 : i32
    return %arg0, %arg1 : i32, i32
  }
}

module attributes {stable_mosaic.version = 11 : i64} {
  func.func @_attn_block_kernel(%arg0: i32, %arg1: memref<1x8x256xbf16, #tpu.memory_space<vmem>>, %arg2: memref<8x8xf32, #tpu.memory_space<vmem>>, %arg3: memref<256x768xbf16, #tpu.memory_space<vmem>>, %arg4: memref<1x768xf32, #tpu.memory_space<vmem>>, %arg5: memref<256x256xbf16, #tpu.memory_space<vmem>>, %arg6: memref<1x256xf32, #tpu.memory_space<vmem>>, %arg7: memref<1x256xf32, #tpu.memory_space<vmem>>, %arg8: memref<1x256xf32, #tpu.memory_space<vmem>>, %arg9: memref<1x8x256xbf16, #tpu.memory_space<vmem>>) attributes {dimension_semantics = [#tpu.dimension_semantics<parallel>], iteration_bounds = array<i64: 2>, scalar_prefetch = 0 : i64, scratch_operands = 0 : i64, tpu.core_type = #tpu.core_type<tc>, window_params = [{transform_indices = @transform_0, window_bounds = array<i64: 1, 8, 256>}, {pipeline_mode = #tpu.pipeline_mode<synchronous>, transform_indices = @transform_1, window_bounds = array<i64: 8, 8>}, {pipeline_mode = #tpu.pipeline_mode<synchronous>, transform_indices = @transform_2, window_bounds = array<i64: 256, 768>}, {pipeline_mode = #tpu.pipeline_mode<synchronous>, transform_indices = @transform_3, window_bounds = array<i64: 1, 768>}, {pipeline_mode = #tpu.pipeline_mode<synchronous>, transform_indices = @transform_4, window_bounds = array<i64: 256, 256>}, {pipeline_mode = #tpu.pipeline_mode<synchronous>, transform_indices = @transform_5, window_bounds = array<i64: 1, 256>}, {pipeline_mode = #tpu.pipeline_mode<synchronous>, transform_indices = @transform_6, window_bounds = array<i64: 1, 256>}, {pipeline_mode = #tpu.pipeline_mode<synchronous>, transform_indices = @transform_7, window_bounds = array<i64: 1, 256>}, {transform_indices = @transform_8, window_bounds = array<i64: 1, 8, 256>}]} {
    %c0 = arith.constant 0 : index
    %c0_0 = arith.constant 0 : index
    %c0_1 = arith.constant 0 : index
    %0 = vector.load %arg1[%c0, %c0_0, %c0_1] : memref<1x8x256xbf16, #tpu.memory_space<vmem>>, vector<1x8x256xbf16>
    %1 = vector.shape_cast %0 : vector<1x8x256xbf16> to vector<8x256xbf16>
    %c0_2 = arith.constant 0 : index
    %c0_3 = arith.constant 0 : index
    %2 = vector.load %arg3[%c0_2, %c0_3] : memref<256x768xbf16, #tpu.memory_space<vmem>>, vector<256x768xbf16>
    %cst = arith.constant dense<0.000000e+00> : vector<8x768xf32>
    %3 = tpu.matmul %1, %2, %cst {dimension_numbers = #tpu.dot_dimension_numbers<[1], [0], [0], [1], [0, 0, 1, 1], [], []>} : vector<8x256xbf16>, vector<256x768xbf16>, vector<8x768xf32> -> vector<8x768xf32>
    %c0_4 = arith.constant 0 : index
    %c0_5 = arith.constant 0 : index
    %4 = vector.load %arg4[%c0_4, %c0_5] : memref<1x768xf32, #tpu.memory_space<vmem>>, vector<1x768xf32>
    %5 = vector.broadcast %4 : vector<1x768xf32> to vector<8x768xf32>
    %6 = arith.addf %3, %5 : vector<8x768xf32>
    %7 = vector.extract_strided_slice %6 {offsets = [0, 0], sizes = [8, 256], strides = [1, 1]} : vector<8x768xf32> to vector<8x256xf32>
    %8 = arith.truncf %7 : vector<8x256xf32> to vector<8x256xbf16>
    %9 = vector.extract_strided_slice %6 {offsets = [0, 256], sizes = [8, 256], strides = [1, 1]} : vector<8x768xf32> to vector<8x256xf32>
    %10 = arith.truncf %9 : vector<8x256xf32> to vector<8x256xbf16>
    %11 = vector.extract_strided_slice %6 {offsets = [0, 512], sizes = [8, 256], strides = [1, 1]} : vector<8x768xf32> to vector<8x256xf32>
    %12 = arith.truncf %11 : vector<8x256xf32> to vector<8x256xbf16>
    %13 = vector.extract_strided_slice %8 {offsets = [0, 0], sizes = [8, 128], strides = [1, 1]} : vector<8x256xbf16> to vector<8x128xbf16>
    %14 = vector.extract_strided_slice %8 {offsets = [0, 128], sizes = [8, 128], strides = [1, 1]} : vector<8x256xbf16> to vector<8x128xbf16>
    %15 = vector.shape_cast %13 : vector<8x128xbf16> to vector<1x8x128xbf16>
    %16 = vector.shape_cast %14 : vector<8x128xbf16> to vector<1x8x128xbf16>
    %17 = tpu.concatenate %15, %16 in 0 : vector<1x8x128xbf16>, vector<1x8x128xbf16> -> vector<2x8x128xbf16>
    %18 = vector.extract_strided_slice %10 {offsets = [0, 0], sizes = [8, 128], strides = [1, 1]} : vector<8x256xbf16> to vector<8x128xbf16>
    %19 = vector.extract_strided_slice %10 {offsets = [0, 128], sizes = [8, 128], strides = [1, 1]} : vector<8x256xbf16> to vector<8x128xbf16>
    %20 = vector.shape_cast %18 : vector<8x128xbf16> to vector<1x8x128xbf16>
    %21 = vector.shape_cast %19 : vector<8x128xbf16> to vector<1x8x128xbf16>
    %22 = tpu.concatenate %20, %21 in 0 : vector<1x8x128xbf16>, vector<1x8x128xbf16> -> vector<2x8x128xbf16>
    %23 = vector.extract_strided_slice %12 {offsets = [0, 0], sizes = [8, 128], strides = [1, 1]} : vector<8x256xbf16> to vector<8x128xbf16>
    %24 = vector.extract_strided_slice %12 {offsets = [0, 128], sizes = [8, 128], strides = [1, 1]} : vector<8x256xbf16> to vector<8x128xbf16>
    %25 = vector.shape_cast %23 : vector<8x128xbf16> to vector<1x8x128xbf16>
    %26 = vector.shape_cast %24 : vector<8x128xbf16> to vector<1x8x128xbf16>
    %27 = tpu.concatenate %25, %26 in 0 : vector<1x8x128xbf16>, vector<1x8x128xbf16> -> vector<2x8x128xbf16>
    "tpu.trace_start"() <{level = 10 : i32, message = "hqd,hkd->hqk"}> : () -> ()
    %cst_6 = arith.constant dense<0.000000e+00> : vector<2x8x8xf32>
    %28 = tpu.matmul %17, %22, %cst_6 {dimension_numbers = #tpu.dot_dimension_numbers<[2], [2], [1], [1], [0, 0, 0, 1, 1, 1], [0], [0]>} : vector<2x8x128xbf16>, vector<2x8x128xbf16>, vector<2x8x8xf32> -> vector<2x8x8xf32>
    "tpu.trace_stop"() : () -> ()
    %c0_7 = arith.constant 0 : index
    %c0_8 = arith.constant 0 : index
    %29 = vector.load %arg2[%c0_7, %c0_8] : memref<8x8xf32, #tpu.memory_space<vmem>>, vector<8x8xf32>
    %30 = vector.shape_cast %29 : vector<8x8xf32> to vector<1x8x8xf32>
    %31 = vector.broadcast %30 : vector<1x8x8xf32> to vector<2x8x8xf32>
    %32 = arith.addf %28, %31 : vector<2x8x8xf32>
    %cst_9 = arith.constant dense<0xFF800000> : vector<2x8xf32>
    %33 = vector.multi_reduction <maximumf>, %32, %cst_9 [2] : vector<2x8x8xf32> to vector<2x8xf32>
    %34 = vector.shape_cast %33 : vector<2x8xf32> to vector<2x8x1xf32>
    %35 = vector.broadcast %34 : vector<2x8x1xf32> to vector<2x8x8xf32>
    %36 = arith.subf %32, %35 : vector<2x8x8xf32>
    %37 = math.exp %36 : vector<2x8x8xf32>
    %cst_10 = arith.constant dense<0.000000e+00> : vector<2x8xf32>
    %38 = vector.multi_reduction <add>, %37, %cst_10 [2] : vector<2x8x8xf32> to vector<2x8xf32>
    %39 = vector.shape_cast %38 : vector<2x8xf32> to vector<2x8x1xf32>
    %40 = tpu.reciprocal %39 {approx = true} : vector<2x8x1xf32> -> vector<2x8x1xf32>
    %41 = vector.broadcast %40 : vector<2x8x1xf32> to vector<2x8x8xf32>
    %42 = arith.mulf %37, %41 : vector<2x8x8xf32>
    %43 = arith.truncf %42 : vector<2x8x8xf32> to vector<2x8x8xbf16>
    "tpu.trace_start"() <{level = 10 : i32, message = "hqk,hkd->hqd"}> : () -> ()
    %cst_11 = arith.constant dense<0.000000e+00> : vector<2x8x128xf32>
    %44 = tpu.matmul %43, %27, %cst_11 {dimension_numbers = #tpu.dot_dimension_numbers<[2], [1], [1], [2], [0, 0, 0, 1, 1, 2], [0], [0]>} : vector<2x8x8xbf16>, vector<2x8x128xbf16>, vector<2x8x128xf32> -> vector<2x8x128xf32>
    "tpu.trace_stop"() : () -> ()
    %45 = vector.extract_strided_slice %44 {offsets = [0, 0, 0], sizes = [1, 8, 128], strides = [1, 1, 1]} : vector<2x8x128xf32> to vector<1x8x128xf32>
    %46 = vector.shape_cast %45 : vector<1x8x128xf32> to vector<8x128xf32>
    %47 = vector.extract_strided_slice %44 {offsets = [1, 0, 0], sizes = [1, 8, 128], strides = [1, 1, 1]} : vector<2x8x128xf32> to vector<1x8x128xf32>
    %48 = vector.shape_cast %47 : vector<1x8x128xf32> to vector<8x128xf32>
    %49 = tpu.concatenate %46, %48 in 1 : vector<8x128xf32>, vector<8x128xf32> -> vector<8x256xf32>
    %50 = arith.truncf %49 : vector<8x256xf32> to vector<8x256xbf16>
    %c0_12 = arith.constant 0 : index
    %c0_13 = arith.constant 0 : index
    %51 = vector.load %arg5[%c0_12, %c0_13] : memref<256x256xbf16, #tpu.memory_space<vmem>>, vector<256x256xbf16>
    %cst_14 = arith.constant dense<0.000000e+00> : vector<8x256xf32>
    %52 = tpu.matmul %50, %51, %cst_14 {dimension_numbers = #tpu.dot_dimension_numbers<[1], [0], [0], [1], [0, 0, 1, 1], [], []>} : vector<8x256xbf16>, vector<256x256xbf16>, vector<8x256xf32> -> vector<8x256xf32>
    %c0_15 = arith.constant 0 : index
    %c0_16 = arith.constant 0 : index
    %53 = vector.load %arg6[%c0_15, %c0_16] : memref<1x256xf32, #tpu.memory_space<vmem>>, vector<1x256xf32>
    %54 = vector.broadcast %53 : vector<1x256xf32> to vector<8x256xf32>
    %55 = arith.addf %52, %54 : vector<8x256xf32>
    %56 = arith.extf %1 : vector<8x256xbf16> to vector<8x256xf32>
    %57 = arith.addf %56, %55 : vector<8x256xf32>
    %c0_17 = arith.constant 0 : index
    %c0_18 = arith.constant 0 : index
    %58 = vector.load %arg7[%c0_17, %c0_18] : memref<1x256xf32, #tpu.memory_space<vmem>>, vector<1x256xf32>
    %c0_19 = arith.constant 0 : index
    %c0_20 = arith.constant 0 : index
    %59 = vector.load %arg8[%c0_19, %c0_20] : memref<1x256xf32, #tpu.memory_space<vmem>>, vector<1x256xf32>
    %cst_21 = arith.constant dense<0.000000e+00> : vector<8xf32>
    %60 = vector.multi_reduction <add>, %57, %cst_21 [1] : vector<8x256xf32> to vector<8xf32>
    %61 = vector.shape_cast %60 : vector<8xf32> to vector<8x1xf32>
    %cst_22 = arith.constant 2.560000e+02 : f32
    %62 = vector.broadcast %cst_22 : f32 to vector<8x1xf32>
    %63 = arith.divf %61, %62 : vector<8x1xf32>
    %64 = vector.broadcast %63 : vector<8x1xf32> to vector<8x256xf32>
    %65 = arith.subf %57, %64 : vector<8x256xf32>
    %66 = arith.mulf %65, %65 : vector<8x256xf32>
    %cst_23 = arith.constant dense<0.000000e+00> : vector<8xf32>
    %67 = vector.multi_reduction <add>, %66, %cst_23 [1] : vector<8x256xf32> to vector<8xf32>
    %68 = vector.shape_cast %67 : vector<8xf32> to vector<8x1xf32>
    %cst_24 = arith.constant 2.560000e+02 : f32
    %69 = vector.broadcast %cst_24 : f32 to vector<8x1xf32>
    %70 = arith.divf %68, %69 : vector<8x1xf32>
    %71 = vector.broadcast %63 : vector<8x1xf32> to vector<8x256xf32>
    %72 = arith.subf %57, %71 : vector<8x256xf32>
    %cst_25 = arith.constant 9.99999974E-6 : f32
    %73 = vector.broadcast %cst_25 : f32 to vector<8x1xf32>
    %74 = arith.addf %70, %73 : vector<8x1xf32>
    %75 = math.rsqrt %74 : vector<8x1xf32>
    %76 = vector.broadcast %75 : vector<8x1xf32> to vector<8x256xf32>
    %77 = arith.mulf %72, %76 : vector<8x256xf32>
    %78 = vector.broadcast %58 : vector<1x256xf32> to vector<8x256xf32>
    %79 = arith.mulf %77, %78 : vector<8x256xf32>
    %80 = vector.broadcast %59 : vector<1x256xf32> to vector<8x256xf32>
    %81 = arith.addf %79, %80 : vector<8x256xf32>
    %82 = arith.truncf %81 : vector<8x256xf32> to vector<8x256xbf16>
    %c0_26 = arith.constant 0 : index
    %c0_27 = arith.constant 0 : index
    %c0_28 = arith.constant 0 : index
    %83 = vector.load %arg9[%c0_26, %c0_27, %c0_28] : memref<1x8x256xbf16, #tpu.memory_space<vmem>>, vector<1x8x256xbf16>
    %84 = vector.shape_cast %83 : vector<1x8x256xbf16> to vector<8x256xbf16>
    %85 = vector.shape_cast %82 : vector<8x256xbf16> to vector<1x8x256xbf16>
    tpu.vector_store %arg9[%c0_26, %c0_27, %c0_28], %85 {strides = array<i32>} : memref<1x8x256xbf16, #tpu.memory_space<vmem>>, vector<1x8x256xbf16>,
    return
  }
  func.func @transform_0(%arg0: i32) -> (i32, i32, i32) {
    %c0_i32 = arith.constant 0 : i32
    %c0_i32_0 = arith.constant 0 : i32
    %c0_i32_1 = arith.constant 0 : i32
    return %arg0, %c0_i32, %c0_i32_0 : i32, i32, i32
  }
  func.func @transform_1(%arg0: i32) -> (i32, i32) {
    %c0_i32 = arith.constant 0 : i32
    %c0_i32_0 = arith.constant 0 : i32
    %c0_i32_1 = arith.constant 0 : i32
    return %c0_i32, %c0_i32_0 : i32, i32
  }
  func.func @transform_2(%arg0: i32) -> (i32, i32) {
    %c0_i32 = arith.constant 0 : i32
    %c0_i32_0 = arith.constant 0 : i32
    %c0_i32_1 = arith.constant 0 : i32
    return %c0_i32, %c0_i32_0 : i32, i32
  }
  func.func @transform_3(%arg0: i32) -> (i32, i32) {
    %c0_i32 = arith.constant 0 : i32
    %c0_i32_0 = arith.constant 0 : i32
    %c0_i32_1 = arith.constant 0 : i32
    return %c0_i32, %c0_i32_0 : i32, i32
  }
  func.func @transform_4(%arg0: i32) -> (i32, i32) {
    %c0_i32 = arith.constant 0 : i32
    %c0_i32_0 = arith.constant 0 : i32
    %c0_i32_1 = arith.constant 0 : i32
    return %c0_i32, %c0_i32_0 : i32, i32
  }
  func.func @transform_5(%arg0: i32) -> (i32, i32) {
    %c0_i32 = arith.constant 0 : i32
    %c0_i32_0 = arith.constant 0 : i32
    %c0_i32_1 = arith.constant 0 : i32
    return %c0_i32, %c0_i32_0 : i32, i32
  }
  func.func @transform_6(%arg0: i32) -> (i32, i32) {
    %c0_i32 = arith.constant 0 : i32
    %c0_i32_0 = arith.constant 0 : i32
    %c0_i32_1 = arith.constant 0 : i32
    return %c0_i32, %c0_i32_0 : i32, i32
  }
  func.func @transform_7(%arg0: i32) -> (i32, i32) {
    %c0_i32 = arith.constant 0 : i32
    %c0_i32_0 = arith.constant 0 : i32
    %c0_i32_1 = arith.constant 0 : i32
    return %c0_i32, %c0_i32_0 : i32, i32
  }
  func.func @transform_8(%arg0: i32) -> (i32, i32, i32) {
    %c0_i32 = arith.constant 0 : i32
    %c0_i32_0 = arith.constant 0 : i32
    %c0_i32_1 = arith.constant 0 : i32
    return %arg0, %c0_i32, %c0_i32_0 : i32, i32, i32
  }
}

</mosaic_0001>

<bundles_post_ra>
// kernel: generator_forward.9
= control target key start
LH: loop header
LB: loop body
LE: loop exit
PB: predicated region body
PF: predicated region fallthrough
CT: control target
= control target key end

     0   :  { %8 = vsyncpa [#allocation4], 0  ;;  %s536_s0 = inlined_call_operand.hbm [shape: bf16[16,256], index: 0, kind: input, shape index: {}]   ;;  %s537_s1 = inlined_call_operand.hbm [shape: bf16[256,64], index: 1, kind: input, shape index: {}]   ;;  %s538_s2 = inlined_call_operand.hbm [shape: f32[1,64], index: 2, kind: input, shape index: {}]   ;;  %s539_s3 = inlined_call_operand.hbm [shape: f32[16,64], index: 3, kind: output, shape index: {}]  }
   0x1   :  { %9 = vsyncpa [#allocation7], 0 }
   0x2   :  { %10 = vsyncpa [#allocation5], 0  ;;  %s447_s12 = smov [#allocation6]   ;;  %s353_s16 = scalar_lea.hbm %s537_s1, 2048 }
   0x3   :  { %s28_s13 = sshll.u32 %s447_s12, 4  ;;  %p354_p0 = scmp.ne.s32.totalorder %s537_s1, %s353_s16  ;;  %s29_s13 = int_to_ptr.vmem [resolvable:$true] %s28_s13 }
   0x4   :  { %p357_p1 = scmp.lt.u32.totalorder %s353_s16, %s537_s1 }
   0x6   :  { %p359_p2 = pnand %p357_p1, %p354_p0 }
   0x8   :  { %362 = shalt.err (!%p359_p2)
}
   0x9   :  { %s363_s21 = scalar_lea.vmem %s29_s13, 2048  ;;  %p368_p4 = scmp.lt.s32.totalorder %s29_s13, %s29_s13 }
   0xa   :  { %p364_p3 = scmp.ne.s32.totalorder %s29_s13, %s363_s21  ;;  %p369_p5 = scmp.lt.s32.totalorder %s363_s21, %s363_s21 }
   0xc   :  { %p370_p6 = por %p369_p5, %p368_p4 }
   0xe   :  { %p371_p7 = pnand %p370_p6, %p364_p3 }
  0x10   :  { %374 = shalt.err (!%p371_p7)
}
  0x11   :  { %s448_s22 = smov 64   ;;  %s449_s23 = smov 4  }
  0x12   :  { %34 = dma.hbm_to_vmem [thread:$0]  %s537_s1, 2048, %s29_s13, [#allocation7], %s448_s22, %s448_s22, %s449_s23  }
  0x13   :  { %s450_s26 = smov [#allocation3]   ;;  %s375_s30 = scalar_lea.hbm %s536_s0, 256 }
  0x14   :  { %s16_s27 = sshll.u32 %s450_s26, 4  ;;  %p376_p8 = scmp.ne.s32.totalorder %s536_s0, %s375_s30  ;;  %s17_s27 = int_to_ptr.vmem [resolvable:$true] %s16_s27 }
  0x15   :  { %p379_p9 = scmp.lt.u32.totalorder %s375_s30, %s536_s0 }
  0x17   :  { %p381_p10 = pnand %p379_p9, %p376_p8 }
  0x19   :  { %384 = shalt.err (!%p381_p10)
}
  0x1a   :  { %s385_s8 = scalar_lea.vmem %s17_s27, 256  ;;  %p390_p12 = scmp.lt.s32.totalorder %s17_s27, %s17_s27 }
  0x1b   :  { %p386_p11 = scmp.ne.s32.totalorder %s17_s27, %s385_s8  ;;  %p391_p13 = scmp.lt.s32.totalorder %s385_s8, %s385_s8 }
  0x1d   :  { %p392_p0 = por %p391_p13, %p390_p12 }
  0x1f   :  { %p393_p1 = pnand %p392_p0, %p386_p11 }
  0x21   :  { %396 = shalt.err (!%p393_p1)
}
  0x22   :  { %s451_s1 = smov 128   ;;  %s452_s9 = smov 8  }
  0x23   :  { %22 = dma.hbm_to_vmem [thread:$0]  %s536_s0, 256, %s17_s27, [#allocation4], %s451_s1, %s451_s1, %s452_s9  }
  0x24   :  { %s453_s12 = smov [#allocation8]   ;;  %s397_s16 = scalar_lea.hbm %s538_s2, 16 }
  0x25   :  { %s41_s13 = sshll.u32 %s453_s12, 4  ;;  %p398_p2 = scmp.ne.s32.totalorder %s538_s2, %s397_s16  ;;  %s42_s13 = int_to_ptr.vmem [resolvable:$true] %s41_s13 }
  0x26   :  { %p401_p3 = scmp.lt.u32.totalorder %s397_s16, %s538_s2 }
  0x28   :  { %p403_p4 = pnand %p401_p3, %p398_p2 }
  0x2a   :  { %406 = shalt.err (!%p403_p4)
}
  0x2b   :  { %s407_s21 = scalar_lea.vmem %s42_s13, 16  ;;  %s411_s0 = scalar_lea.vmem %s42_s13, 32 }
  0x2c   :  { %p408_p5 = scmp.ne.s32.totalorder %s42_s13, %s407_s21  ;;  %p412_p6 = scmp.lt.s32.totalorder %s42_s13, %s42_s13 }
  0x2d   :  { %p413_p7 = scmp.lt.s32.totalorder %s411_s0, %s407_s21 }
  0x2f   :  { %p414_p8 = por %p413_p7, %p412_p6 }
  0x31   :  { %p415_p9 = pnand %p414_p8, %p408_p5 }
  0x33   :  { %418 = shalt.err (!%p415_p9)
}
  0x34   :  { %44 = dma.hbm_to_vmem [thread:$0]  %s538_s2, 16, %s42_s13, [#allocation7]  }
  0x35   :  { %441 = dma.done.wait [#allocation4], 256  }
  0x36   :  { %442 = vsyncadd [#allocation4], 4294967040 }
  0x37   :  { %443 = dma.done.wait [#allocation7], 2064  }
  0x38   :  { %444 = vsyncadd [#allocation7], 4294965232  ;;  %v334_v0 = vld [vmem:[#allocation6 + $0x40] sm:$0xff]   ;;  %v336_v2 = vld [vmem:[#allocation6 + $0x48] sm:$0xff]   ;;  %vm59_vm0 = vcmask 523264   ;;  %v454_v18 = vmov 0.0  }
  0x39   :  { %v335_v1 = vld [vmem:[#allocation6] sm:$0xff]   ;;  %303 = vmatprep.subr.bf16.mxu0 %v334_v0  ;;  %v337_v3 = vld [vmem:[#allocation6 + $0x8] sm:$0xff]   ;;  %v338_v4 = vld [vmem:[#allocation6 + $0x50] sm:$0xff]   ;;  %60 = vst.msk [vmem:[#allocation2] sm:$0xff] %vm59_vm0, %v454_v18  ;;  %s455_s2 = smov [#allocation9]  }
  0x3a   :  { %304 = vmatpush3.bf16.msra.mxu0 %v335_v1  ;;  %v339_v5 = vld [vmem:[#allocation6 + $0x10] sm:$0xff]   ;;  %v340_v6 = vld [vmem:[#allocation6 + $0x58] sm:$0xff]   ;;  %v342_v8 = vld [vmem:[#allocation6 + $0x60] sm:$0xff]   ;;  %61 = vst.msk [vmem:[#allocation2 + $0x8] sm:$0xff] %vm59_vm0, %v454_v18  ;;  %s271_s24 = sshll.u32 %s455_s2, 4  ;;  %s272_s24 = int_to_ptr.vmem [resolvable:$true] %s271_s24 }
  0x3b   :  { %305 = vmatprep.subr.bf16.mxu0 %v336_v2  ;;  %v341_v7 = vld [vmem:[#allocation6 + $0x18] sm:$0xff]   ;;  %v343_v9 = vld [vmem:[#allocation6 + $0x20] sm:$0xff]   ;;  %v344_v10 = vld [vmem:[#allocation6 + $0x68] sm:$0xff]   ;;  %s419_s25 = scalar_lea.vmem %s272_s24, 256  ;;  %p424_p11 = scmp.lt.s32.totalorder %s272_s24, %s272_s24 }
  0x3c   :  { %v352_v11 = vld [vmem:[#allocation3 + $0x4] ss:$8 sps:$4 sm:$0xff]   ;;  %v345_v12 = vld [vmem:[#allocation6 + $0x28] sm:$0xff]   ;;  %v350_v17 = vld [vmem:[#allocation3] ss:$8 sps:$4 sm:$0xff]   ;;  %p420_p10 = scmp.ne.s32.totalorder %s272_s24, %s419_s25  ;;  %p425_p12 = scmp.lt.s32.totalorder %s419_s25, %s419_s25 }
  0x3d   :  { %236 = vmatprep.mubr.bf16.mxu0 %v352_v11  ;;  %v346_v13 = vld [vmem:[#allocation6 + $0x70] sm:$0xff]   ;;  %v348_v15 = vld [vmem:[#allocation6 + $0x78] sm:$0xff]   ;;  %v302_v29 = vld [vmem:[#allocation8] ss:$0 sm:$0xff] }
  0x3e   :  { %306 = vmatpush3.bf16.msra.mxu0 %v337_v3  ;;  %v347_v14 = vld [vmem:[#allocation6 + $0x30] sm:$0xff]   ;;  %v349_v16 = vld [vmem:[#allocation6 + $0x38] sm:$0xff]   ;;  %p426_p13 = por %p425_p12, %p424_p11 }
  0x3f   :  { %307 = vmatprep.subr.bf16.mxu0 %v338_v4 }
  0x40   :  { %v62_v20 = vld [vmem:[#allocation2] sm:$0xff]  ;;  %p427_p0 = pnand %p426_p13, %p420_p10 }
  0x41   :  { %v63_v24 = vld [vmem:[#allocation2 + $0x8] sm:$0xff] }
  0x42   :  { %308 = vmatpush3.bf16.msra.mxu0 %v339_v5 }
  0x43   :  { %309 = vmatprep.subr.bf16.mxu0 %v340_v6 }
  0x46   :  { %310 = vmatpush3.bf16.msra.mxu0 %v341_v7 }
  0x47   :  { %311 = vmatprep.subr.bf16.mxu0 %v342_v8 }
  0x4a   :  { %312 = vmatpush3.bf16.msra.mxu0 %v343_v9 }
  0x4b   :  { %313 = vmatprep.subr.bf16.mxu0 %v344_v10 }
  0x4e   :  { %314 = vmatpush3.bf16.msra.mxu0 %v345_v12 }
  0x4f   :  { %315 = vmatprep.subr.bf16.mxu0 %v346_v13 }
  0x52   :  { %316 = vmatpush3.bf16.msra.mxu0 %v347_v14 }
  0x53   :  { %317 = vmatprep.subr.bf16.mxu0 %v348_v15 }
  0x56   :  { %318 = vmatpush3.bf16.msra.mxu0 %v349_v16 }
  0x59   :  { %237 = vmatmul.mubr.bf16.vlgmr.msra.gmra.mrb[0].mxu0 %v350_v17 }
 0x12c   :  { %v319_v19 = vpop.f32.mrb[0].mxu0 }
 0x12d   :  { %v320_v21 = vpop.f32.mrb[1].mxu0 }
 0x12e   :  { %v321_v22 = vadd.f32 %v320_v21, %v319_v19  ;;  %v322_v23 = vpop.f32.mrb[2].mxu0 }
 0x12f   :  { %v323_v25 = vpop.f32.mrb[3].mxu0 }
 0x130   :  { %v245_v26 = vadd.f32 %v321_v22, %v62_v20  ;;  %v324_v27 = vadd.f32 %v323_v25, %v322_v23 }
 0x132   :  { %248 = vst.msk [vmem:[#allocation2] sm:$0xff] %vm59_vm0, %v245_v26  ;;  %v246_v28 = vadd.f32 %v324_v27, %v63_v24 }
 0x134   :  { %249 = vst.msk [vmem:[#allocation2 + $0x8] sm:$0xff] %vm59_vm0, %v246_v28 }
 0x139   :  { %v253_v30 = vld [vmem:[#allocation2] sm:$0xff] }
 0x13a   :  { %v262_v31 = vadd.f32 %v302_v29, %v253_v30 }
 0x13b   :  { %v254_v32 = vld [vmem:[#allocation2 + $0x8] sm:$0xff] }
 0x13c   :  { %v263_v33 = vadd.f32 %v302_v29, %v254_v32  ;;  %264 = vst.msk [vmem:[#allocation9] sm:$0xff] %vm59_vm0, %v262_v31 }
 0x13e   :  { %265 = vst.msk [vmem:[#allocation9 + $0x8] sm:$0xff] %vm59_vm0, %v263_v33 }
 0x13f   :  { %430 = shalt.err (!%p427_p0)
}
 0x140   :  { %s431_s28 = scalar_lea.hbm %s539_s3, 256 }
 0x141   :  { %p432_p1 = scmp.ne.s32.totalorder %s539_s3, %s431_s28  ;;  %p435_p2 = scmp.lt.u32.totalorder %s431_s28, %s539_s3 }
 0x143   :  { %p437_p3 = pnand %p435_p2, %p432_p1 }
 0x145   :  { %440 = shalt.err (!%p437_p3)
}
 0x146   :  { %277 = dma.vmem_to_hbm [thread:$0]  %s272_s24, 256, %s539_s3, [#allocation5], %s451_s1, %s451_s1, %s452_s9  }
 0x147   :  { %445 = dma.done.wait [#allocation5], 256  }
 0x148   :  { %446 = vsyncadd [#allocation5], 4294967040 }
 0x149   :  { %281 = vsyncpa [#allocation4], 1 }
 0x14a   :  { %282 = vsyncpa [#allocation7], 1 }
 0x14b   :  { %283 = vsyncpa [#allocation5], 1 }

// kernel: generator_forward.6
= control target key start
LH: loop header
LB: loop body
LE: loop exit
PB: predicated region body
PF: predicated region fallthrough
CT: control target
= control target key end

     0   :  { %12 = vsyncpa [#allocation4], 0  ;;  %s1985_s0 = inlined_call_operand.hbm [shape: bf16[16,256], index: 0, kind: input, shape index: {}]   ;;  %s1986_s1 = inlined_call_operand.hbm [shape: bf16[256,512], index: 1, kind: input, shape index: {}]   ;;  %s1987_s2 = inlined_call_operand.hbm [shape: f32[1,512], index: 2, kind: input, shape index: {}]   ;;  %s1988_s3 = inlined_call_operand.hbm [shape: bf16[512,256], index: 3, kind: input, shape index: {}]   ;;  %s1989_s4 = inlined_call_operand.hbm [shape: f32[1,256], index: 4, kind: input, shape index: {}]   ;;  %s1990_s5 = inlined_call_operand.hbm [shape: f32[1,256], index: 5, kind: input, shape index: {}]   ;;  %s1991_s6 = inlined_call_operand.hbm [shape: f32[1,256], index: 6, kind: input, shape index: {}]   ;;  %s1992_s7 = inlined_call_operand.hbm [shape: bf16[16,256], index: 7, kind: output, shape index: {}]  }
   0x1   :  { %13 = vsyncpa [#allocation7], 0 }
   0x2   :  { %14 = vsyncpa [#allocation10], 0 }
   0x3   :  { %15 = vsyncpa [#allocation13], 0 }
   0x4   :  { %16 = vsyncpa [#allocation5], 0  ;;  %s1784_s24 = smov [#allocation6]   ;;  %s1598_s28 = scalar_lea.hbm %s1986_s1, 8192 }
   0x5   :  { %s34_s25 = sshll.u32 %s1784_s24, 4  ;;  %p1599_p0 = scmp.ne.s32.totalorder %s1986_s1, %s1598_s28  ;;  %s35_s25 = int_to_ptr.vmem [resolvable:$true] %s34_s25 }
   0x6   :  { %p1602_p1 = scmp.lt.u32.totalorder %s1598_s28, %s1986_s1 }
   0x8   :  { %p1604_p2 = pnand %p1602_p1, %p1599_p0 }
   0xa   :  { %1607 = shalt.err (!%p1604_p2)
}
   0xb   :  { %s1608_s10 = scalar_lea.vmem %s35_s25, 8192  ;;  %p1613_p4 = scmp.lt.s32.totalorder %s35_s25, %s35_s25 }
   0xc   :  { %p1609_p3 = scmp.ne.s32.totalorder %s35_s25, %s1608_s10  ;;  %p1614_p5 = scmp.lt.s32.totalorder %s1608_s10, %s1608_s10 }
   0xe   :  { %p1615_p6 = por %p1614_p5, %p1613_p4 }
  0x10   :  { %p1616_p7 = pnand %p1615_p6, %p1609_p3 }
  0x12   :  { %1619 = shalt.err (!%p1616_p7)
}
  0x13   :  { %s1785_s11 = smov 256   ;;  %s1786_s12 = smov 16  }
  0x14   :  { %40 = dma.hbm_to_vmem [thread:$0]  %s1986_s1, 8192, %s35_s25, [#allocation7], %s1785_s11, %s1785_s11, %s1786_s12  }
  0x15   :  { %s1787_s15 = smov [#allocation9]   ;;  %s1788_s17 = smov [#allocation12]  }
  0x16   :  { %s56_s16 = sshll.u32 %s1787_s15, 4  ;;  %s79_s18 = sshll.u32 %s1788_s17, 4  ;;  %s57_s16 = int_to_ptr.vmem [resolvable:$true] %s56_s16  ;;  %s80_s18 = int_to_ptr.vmem [resolvable:$true] %s79_s18 }
  0x17   :  { %s1620_s21 = scalar_lea.hbm %s1988_s3, 8192 }
  0x18   :  { %p1621_p8 = scmp.ne.s32.totalorder %s1988_s3, %s1620_s21  ;;  %p1624_p9 = scmp.lt.u32.totalorder %s1620_s21, %s1988_s3 }
  0x1a   :  { %p1626_p10 = pnand %p1624_p9, %p1621_p8 }
  0x1c   :  { %1629 = shalt.err (!%p1626_p10)
}
  0x1d   :  { %s1630_s1 = scalar_lea.vmem %s57_s16, 8192  ;;  %p1635_p12 = scmp.lt.s32.totalorder %s57_s16, %s57_s16 }
  0x1e   :  { %p1631_p11 = scmp.ne.s32.totalorder %s57_s16, %s1630_s1  ;;  %p1636_p13 = scmp.lt.s32.totalorder %s1630_s1, %s1630_s1 }
  0x20   :  { %p1637_p0 = por %p1636_p13, %p1635_p12 }
  0x22   :  { %p1638_p1 = pnand %p1637_p0, %p1631_p11 }
  0x24   :  { %1641 = shalt.err (!%p1638_p1)
}
  0x25   :  { %s1789_s25 = smov 128   ;;  %s1790_s27 = smov 8  }
  0x26   :  { %62 = dma.hbm_to_vmem [thread:$0]  %s1988_s3, 8192, %s57_s16, [#allocation10], %s1789_s25, %s1789_s25, %s1790_s27  }
  0x27   :  { %s1642_s9 = scalar_lea.hbm %s1990_s5, 32 }
  0x28   :  { %p1643_p2 = scmp.ne.s32.totalorder %s1990_s5, %s1642_s9  ;;  %p1646_p3 = scmp.lt.u32.totalorder %s1642_s9, %s1990_s5 }
  0x2a   :  { %p1648_p4 = pnand %p1646_p3, %p1643_p2 }
  0x2c   :  { %1651 = shalt.err (!%p1648_p4)
}
  0x2d   :  { %s1652_s14 = scalar_lea.vmem %s80_s18, 32  ;;  %p1657_p6 = scmp.lt.s32.totalorder %s80_s18, %s80_s18 }
  0x2e   :  { %p1653_p5 = scmp.ne.s32.totalorder %s80_s18, %s1652_s14  ;;  %p1658_p7 = scmp.lt.s32.totalorder %s1652_s14, %s1652_s14 }
  0x30   :  { %p1659_p8 = por %p1658_p7, %p1657_p6 }
  0x32   :  { %p1660_p9 = pnand %p1659_p8, %p1653_p5 }
  0x34   :  { %1663 = shalt.err (!%p1660_p9)
}
  0x35   :  { %82 = dma.hbm_to_vmem [thread:$0]  %s1990_s5, 32, %s80_s18, [#allocation13]  }
  0x36   :  { %s1791_s16 = smov [#allocation3]   ;;  %s1792_s19 = smov [#allocation8]  }
  0x37   :  { %s22_s17 = sshll.u32 %s1791_s16, 4  ;;  %s47_s20 = sshll.u32 %s1792_s19, 4  ;;  %s23_s17 = int_to_ptr.vmem [resolvable:$true] %s22_s17  ;;  %s48_s20 = int_to_ptr.vmem [resolvable:$true] %s47_s20 }
  0x38   :  { %s1664_s23 = scalar_lea.hbm %s1985_s0, 256 }
  0x39   :  { %p1665_p10 = scmp.ne.s32.totalorder %s1985_s0, %s1664_s23  ;;  %p1668_p11 = scmp.lt.u32.totalorder %s1664_s23, %s1985_s0 }
  0x3b   :  { %p1670_p12 = pnand %p1668_p11, %p1665_p10 }
  0x3d   :  { %1673 = shalt.err (!%p1670_p12)
}
  0x3e   :  { %s1674_s5 = scalar_lea.vmem %s23_s17, 256  ;;  %p1679_p0 = scmp.lt.s32.totalorder %s23_s17, %s23_s17 }
  0x3f   :  { %p1675_p13 = scmp.ne.s32.totalorder %s23_s17, %s1674_s5  ;;  %p1680_p1 = scmp.lt.s32.totalorder %s1674_s5, %s1674_s5 }
  0x41   :  { %p1681_p2 = por %p1680_p1, %p1679_p0 }
  0x43   :  { %p1682_p3 = pnand %p1681_p2, %p1675_p13 }
  0x45   :  { %1685 = shalt.err (!%p1682_p3)
}
  0x46   :  { %28 = dma.hbm_to_vmem [thread:$0]  %s1985_s0, 256, %s23_s17, [#allocation4], %s1789_s25, %s1789_s25, %s1790_s27  }
  0x47   :  { %s1686_s9 = scalar_lea.hbm %s1987_s2, 64 }
  0x48   :  { %p1687_p4 = scmp.ne.s32.totalorder %s1987_s2, %s1686_s9  ;;  %p1690_p5 = scmp.lt.u32.totalorder %s1686_s9, %s1987_s2 }
  0x4a   :  { %p1692_p6 = pnand %p1690_p5, %p1687_p4 }
  0x4c   :  { %1695 = shalt.err (!%p1692_p6)
}
  0x4d   :  { %s1696_s14 = scalar_lea.vmem %s48_s20, 64  ;;  %p1701_p8 = scmp.lt.s32.totalorder %s48_s20, %s48_s20 }
  0x4e   :  { %p1697_p7 = scmp.ne.s32.totalorder %s48_s20, %s1696_s14  ;;  %p1702_p9 = scmp.lt.s32.totalorder %s1696_s14, %s1696_s14 }
  0x50   :  { %p1703_p10 = por %p1702_p9, %p1701_p8 }
  0x52   :  { %p1704_p11 = pnand %p1703_p10, %p1697_p7 }
  0x54   :  { %1707 = shalt.err (!%p1704_p11)
}
  0x55   :  { %50 = dma.hbm_to_vmem [thread:$0]  %s1987_s2, 64, %s48_s20, [#allocation7]  }
  0x56   :  { %s1793_s15 = smov [#allocation11]   ;;  %s1794_s17 = smov [#allocation14]  }
  0x57   :  { %s69_s16 = sshll.u32 %s1793_s15, 4  ;;  %s89_s19 = sshll.u32 %s1794_s17, 4  ;;  %s70_s16 = int_to_ptr.vmem [resolvable:$true] %s69_s16  ;;  %s90_s19 = int_to_ptr.vmem [resolvable:$true] %s89_s19 }
  0x58   :  { %s1708_s23 = scalar_lea.hbm %s1989_s4, 32 }
  0x59   :  { %p1709_p12 = scmp.ne.s32.totalorder %s1989_s4, %s1708_s23  ;;  %p1712_p13 = scmp.lt.u32.totalorder %s1708_s23, %s1989_s4 }
  0x5b   :  { %p1714_p0 = pnand %p1712_p13, %p1709_p12 }
  0x5d   :  { %1717 = shalt.err (!%p1714_p0)
}
  0x5e   :  { %s1718_s2 = scalar_lea.vmem %s70_s16, 32  ;;  %p1723_p2 = scmp.lt.s32.totalorder %s70_s16, %s70_s16 }
  0x5f   :  { %p1719_p1 = scmp.ne.s32.totalorder %s70_s16, %s1718_s2  ;;  %p1724_p3 = scmp.lt.s32.totalorder %s1718_s2, %s1718_s2 }
  0x61   :  { %p1725_p4 = por %p1724_p3, %p1723_p2 }
  0x63   :  { %p1726_p5 = pnand %p1725_p4, %p1719_p1 }
  0x65   :  { %1729 = shalt.err (!%p1726_p5)
}
  0x66   :  { %72 = dma.hbm_to_vmem [thread:$0]  %s1989_s4, 32, %s70_s16, [#allocation10]  }
  0x67   :  { %s1730_s30 = scalar_lea.hbm %s1991_s6, 32 }
  0x68   :  { %p1731_p6 = scmp.ne.s32.totalorder %s1991_s6, %s1730_s30  ;;  %p1734_p7 = scmp.lt.u32.totalorder %s1730_s30, %s1991_s6 }
  0x6a   :  { %p1736_p8 = pnand %p1734_p7, %p1731_p6 }
  0x6c   :  { %1739 = shalt.err (!%p1736_p8)
}
  0x6d   :  { %s1740_s12 = scalar_lea.vmem %s90_s19, 32  ;;  %p1745_p10 = scmp.lt.s32.totalorder %s90_s19, %s90_s19 }
  0x6e   :  { %p1741_p9 = scmp.ne.s32.totalorder %s90_s19, %s1740_s12  ;;  %p1746_p11 = scmp.lt.s32.totalorder %s1740_s12, %s1740_s12 }
  0x70   :  { %p1747_p12 = por %p1746_p11, %p1745_p10 }
  0x72   :  { %p1748_p13 = pnand %p1747_p12, %p1741_p9 }
  0x74   :  { %1751 = shalt.err (!%p1748_p13)
}
  0x75   :  { %92 = dma.hbm_to_vmem [thread:$0]  %s1991_s6, 32, %s90_s19, [#allocation13]  }
  0x76   :  { %1774 = dma.done.wait [#allocation4], 256  }
  0x77   :  { %1775 = vsyncadd [#allocation4], 4294967040 }
  0x78   :  { %1776 = dma.done.wait [#allocation7], 8256  }
  0x79   :  { %1777 = vsyncadd [#allocation7], 4294959040 }
  0x7a   :  { %1778 = dma.done.wait [#allocation10], 8224  }
  0x7b   :  { %1779 = vsyncadd [#allocation10], 4294959072 }
  0x7c   :  { %1780 = dma.done.wait [#allocation13], 64  }
  0x7d   :  { %1781 = vsyncadd [#allocation13], 4294967232  ;;  %v1400_v0 = vld [vmem:[#allocation6 + $0x4] ss:$16 sps:$4 sm:$0xff]   ;;  %v1402_v1 = vld [vmem:[#allocation6] ss:$16 sps:$4 sm:$0xff]  }
  0x7e   :  { %540 = vmatprep.subr.bf16.mxu1 %v1400_v0  ;;  %v1403_v2 = vld [vmem:[#allocation6 + $0x24] ss:$16 sps:$4 sm:$0xff]   ;;  %v1405_v3 = vld [vmem:[#allocation6 + $0x20] ss:$16 sps:$4 sm:$0xff]   ;;  %v1928_v14 = vld [vmem:[#allocation3 + $0x8] sm:$0xff]  ;;  %s1795_s6 = smov [#allocation15]  }
  0x7f   :  { %541 = vmatpush1.bf16.msra.mxu1 %v1402_v1  ;;  %v1406_v4 = vld [vmem:[#allocation6 + $0x44] ss:$16 sps:$4 sm:$0xff]   ;;  %v1408_v5 = vld [vmem:[#allocation6 + $0x40] ss:$16 sps:$4 sm:$0xff]   ;;  %v1452_v45 = vld [vmem:[#allocation6 + $0xc] ss:$16 sps:$4 sm:$0xff]  }
  0x80   :  { %542 = vmatprep.subr.bf16.mxu1 %v1403_v2  ;;  %v1409_v6 = vld [vmem:[#allocation6 + $0x64] ss:$16 sps:$4 sm:$0xff]   ;;  %v1411_v7 = vld [vmem:[#allocation6 + $0x60] ss:$16 sps:$4 sm:$0xff]   ;;  %v1450_v47 = vld [vmem:[#allocation6 + $0x8] ss:$16 sps:$4 sm:$0xff]  }
  0x81   :  { %v1412_v8 = vld [vmem:[#allocation6 + $0x84] ss:$16 sps:$4 sm:$0xff]   ;;  %v1414_v9 = vld [vmem:[#allocation6 + $0x80] ss:$16 sps:$4 sm:$0xff]   ;;  %v1455_v49 = vld [vmem:[#allocation6 + $0x2c] ss:$16 sps:$4 sm:$0xff]  }
  0x82   :  { %v1415_v10 = vld [vmem:[#allocation6 + $0xa4] ss:$16 sps:$4 sm:$0xff]   ;;  %v1417_v11 = vld [vmem:[#allocation6 + $0xa0] ss:$16 sps:$4 sm:$0xff]   ;;  %v1453_v52 = vld [vmem:[#allocation6 + $0x28] ss:$16 sps:$4 sm:$0xff]  }
  0x83   :  { %543 = vmatpush1.bf16.msra.mxu1 %v1405_v3  ;;  %v1418_v12 = vld [vmem:[#allocation6 + $0xc4] ss:$16 sps:$4 sm:$0xff]   ;;  %v1420_v16 = vld [vmem:[#allocation6 + $0xc0] ss:$16 sps:$4 sm:$0xff]   ;;  %v1458_v53 = vld [vmem:[#allocation6 + $0x4c] ss:$16 sps:$4 sm:$0xff]  }
  0x84   :  { %544 = vmatprep.subr.bf16.mxu1 %v1406_v4  ;;  %v1926_v13 = vld [vmem:[#allocation3] sm:$0xff]  ;;  %v1500_v29 = vld [vmem:[#allocation9] ss:$8 sps:$4 sm:$0xff]   ;;  %v1501_v30 = vld [vmem:[#allocation9 + $0x14] ss:$8 sps:$4 sm:$0xff]   ;;  %s1235_s14 = sshll.u32 %s1795_s6, 4  ;;  %s1236_s14 = int_to_ptr.vmem [resolvable:$true] %s1235_s14 }
  0x85   :  { %v1932_v15 = vcombine.high %v1926_v13, %v1928_v14  ;;  %v1421_v17 = vld [vmem:[#allocation6 + $0xe4] ss:$16 sps:$4 sm:$0xff]   ;;  %v1423_v18 = vld [vmem:[#allocation6 + $0xe0] ss:$16 sps:$4 sm:$0xff]   ;;  %v1937_v48 = vcombine.low %v1926_v13, %v1928_v14  ;;  %v1456_v56 = vld [vmem:[#allocation6 + $0x48] ss:$16 sps:$4 sm:$0xff]   ;;  %p1757_p1 = scmp.lt.s32.totalorder %s1236_s14, %s1236_s14 }
  0x86   :  { %v1424_v19 = vld [vmem:[#allocation6 + $0x104] ss:$16 sps:$4 sm:$0xff]   ;;  %v1426_v20 = vld [vmem:[#allocation6 + $0x100] ss:$16 sps:$4 sm:$0xff]   ;;  %v1461_v57 = vld [vmem:[#allocation6 + $0x6c] ss:$16 sps:$4 sm:$0xff]  }
  0x87   :  { %545 = vmatpush1.bf16.msra.mxu1 %v1408_v5  ;;  %572 = vmatprep.mubr.bf16.mxu1 %v1932_v15  ;;  %v1427_v21 = vld [vmem:[#allocation6 + $0x124] ss:$16 sps:$4 sm:$0xff]   ;;  %v1429_v22 = vld [vmem:[#allocation6 + $0x120] ss:$16 sps:$4 sm:$0xff]   ;;  %v1459_v60 = vld [vmem:[#allocation6 + $0x68] ss:$16 sps:$4 sm:$0xff]  }
  0x88   :  { %546 = vmatprep.subr.bf16.mxu1 %v1409_v6  ;;  %v1430_v23 = vld [vmem:[#allocation6 + $0x144] ss:$16 sps:$4 sm:$0xff]   ;;  %v1432_v24 = vld [vmem:[#allocation6 + $0x140] ss:$16 sps:$4 sm:$0xff]   ;;  %v1464_v61 = vld [vmem:[#allocation6 + $0x8c] ss:$16 sps:$4 sm:$0xff]  }
  0x89   :  { %v1433_v25 = vld [vmem:[#allocation6 + $0x164] ss:$16 sps:$4 sm:$0xff]   ;;  %v1435_v26 = vld [vmem:[#allocation6 + $0x160] ss:$16 sps:$4 sm:$0xff]   ;;  %v1462_v0 = vld [vmem:[#allocation6 + $0x88] ss:$16 sps:$4 sm:$0xff]  }
  0x8a   :  { %v1436_v27 = vld [vmem:[#allocation6 + $0x184] ss:$16 sps:$4 sm:$0xff]   ;;  %v1498_v28 = vld [vmem:[#allocation9 + $0x4] ss:$8 sps:$4 sm:$0xff]   ;;  %v1507_v38 = vld [vmem:[#allocation9 + $0x34] ss:$8 sps:$4 sm:$0xff]  }
  0x8b   :  { %547 = vmatpush1.bf16.msra.mxu1 %v1411_v7  ;;  %v1438_v31 = vld [vmem:[#allocation6 + $0x180] ss:$16 sps:$4 sm:$0xff]   ;;  %1026 = vmatprep.subr.bf16.mxu0 %v1498_v28  ;;  %v1503_v32 = vld [vmem:[#allocation9 + $0x10] ss:$8 sps:$4 sm:$0xff]   ;;  %v1506_v36 = vld [vmem:[#allocation9 + $0x20] ss:$8 sps:$4 sm:$0xff]  }
  0x8c   :  { %548 = vmatprep.subr.bf16.mxu1 %v1412_v8  ;;  %1027 = vmatpush1.bf16.msra.mxu0 %v1500_v29  ;;  %v1439_v33 = vld [vmem:[#allocation6 + $0x1a4] ss:$16 sps:$4 sm:$0xff]   ;;  %v1504_v34 = vld [vmem:[#allocation9 + $0x24] ss:$8 sps:$4 sm:$0xff]   ;;  %v1513_v46 = vld [vmem:[#allocation9 + $0x54] ss:$8 sps:$4 sm:$0xff]  }
  0x8d   :  { %1028 = vmatprep.subr.bf16.mxu0 %v1501_v30  ;;  %v1441_v35 = vld [vmem:[#allocation6 + $0x1a0] ss:$16 sps:$4 sm:$0xff]   ;;  %v1442_v37 = vld [vmem:[#allocation6 + $0x1c4] ss:$16 sps:$4 sm:$0xff]   ;;  %v1467_v1 = vld [vmem:[#allocation6 + $0xac] ss:$16 sps:$4 sm:$0xff]  }
  0x8e   :  { %v1444_v39 = vld [vmem:[#allocation6 + $0x1c0] ss:$16 sps:$4 sm:$0xff]   ;;  %v1509_v40 = vld [vmem:[#allocation9 + $0x30] ss:$8 sps:$4 sm:$0xff]   ;;  %v1512_v44 = vld [vmem:[#allocation9 + $0x40] ss:$8 sps:$4 sm:$0xff]  }
  0x8f   :  { %549 = vmatpush1.bf16.msra.mxu1 %v1414_v9  ;;  %v1445_v41 = vld [vmem:[#allocation6 + $0x1e4] ss:$16 sps:$4 sm:$0xff]   ;;  %v1510_v42 = vld [vmem:[#allocation9 + $0x44] ss:$8 sps:$4 sm:$0xff]   ;;  %v1519_v55 = vld [vmem:[#allocation9 + $0x74] ss:$8 sps:$4 sm:$0xff]  }
  0x90   :  { %550 = vmatprep.subr.bf16.mxu1 %v1415_v10  ;;  %1029 = vmatpush1.bf16.msra.mxu0 %v1503_v32  ;;  %v1447_v43 = vld [vmem:[#allocation6 + $0x1e0] ss:$16 sps:$4 sm:$0xff]   ;;  %v1515_v50 = vld [vmem:[#allocation9 + $0x50] ss:$8 sps:$4 sm:$0xff]   ;;  %v1518_v54 = vld [vmem:[#allocation9 + $0x60] ss:$8 sps:$4 sm:$0xff]  }
  0x91   :  { %1030 = vmatprep.subr.bf16.mxu0 %v1504_v34  ;;  %v1516_v51 = vld [vmem:[#allocation9 + $0x64] ss:$8 sps:$4 sm:$0xff]   ;;  %v1521_v58 = vld [vmem:[#allocation9 + $0x70] ss:$8 sps:$4 sm:$0xff]   ;;  %v1524_v62 = vld [vmem:[#allocation9 + $0x80] ss:$8 sps:$4 sm:$0xff]  }
  0x92   :  { %v1522_v59 = vld [vmem:[#allocation9 + $0x84] ss:$8 sps:$4 sm:$0xff]   ;;  %v1525_v63 = vld [vmem:[#allocation9 + $0x94] ss:$8 sps:$4 sm:$0xff]   ;;  %v1527_v2 = vld [vmem:[#allocation9 + $0x90] ss:$8 sps:$4 sm:$0xff]  }
  0x93   :  { %551 = vmatpush1.bf16.msra.mxu1 %v1417_v11  ;;  %v1528_v3 = vld [vmem:[#allocation9 + $0xa4] ss:$8 sps:$4 sm:$0xff]   ;;  %v1470_v5 = vld [vmem:[#allocation6 + $0xcc] ss:$16 sps:$4 sm:$0xff]   ;;  %v1531_v7 = vld [vmem:[#allocation9 + $0xb4] ss:$8 sps:$4 sm:$0xff]  }
  0x94   :  { %552 = vmatprep.subr.bf16.mxu1 %v1418_v12  ;;  %1031 = vmatpush1.bf16.msra.mxu0 %v1506_v36  ;;  %v1465_v4 = vld [vmem:[#allocation6 + $0xa8] ss:$16 sps:$4 sm:$0xff]   ;;  %v1530_v6 = vld [vmem:[#allocation9 + $0xa0] ss:$8 sps:$4 sm:$0xff]   ;;  %v1533_v10 = vld [vmem:[#allocation9 + $0xb0] ss:$8 sps:$4 sm:$0xff]  }
  0x95   :  { %1032 = vmatprep.subr.bf16.mxu0 %v1507_v38  ;;  %v1468_v8 = vld [vmem:[#allocation6 + $0xc8] ss:$16 sps:$4 sm:$0xff]   ;;  %v1473_v9 = vld [vmem:[#allocation6 + $0xec] ss:$16 sps:$4 sm:$0xff]   ;;  %s1752_s0 = scalar_lea.vmem %s1236_s14, 256 }
  0x96   :  { %v1534_v11 = vld [vmem:[#allocation9 + $0xc4] ss:$8 sps:$4 sm:$0xff]   ;;  %v1494_v29 = vld [vmem:[#allocation6 + $0x1cc] ss:$16 sps:$4 sm:$0xff]   ;;  %v1543_v36 = vld [vmem:[#allocation9 + $0xf4] ss:$8 sps:$4 sm:$0xff]   ;;  %p1753_p0 = scmp.ne.s32.totalorder %s1236_s14, %s1752_s0  ;;  %p1758_p2 = scmp.lt.s32.totalorder %s1752_s0, %s1752_s0 }
  0x97   :  { %553 = vmatpush1.bf16.msra.mxu1 %v1420_v16  ;;  %v1471_v12 = vld [vmem:[#allocation6 + $0xe8] ss:$16 sps:$4 sm:$0xff]   ;;  %v1536_v16 = vld [vmem:[#allocation9 + $0xc0] ss:$8 sps:$4 sm:$0xff]  }
  0x98   :  { %554 = vmatprep.subr.bf16.mxu1 %v1421_v17  ;;  %1033 = vmatpush1.bf16.msra.mxu0 %v1509_v40  ;;  %v1537_v17 = vld [vmem:[#allocation9 + $0xd4] ss:$8 sps:$4 sm:$0xff]   ;;  %v1540_v34 = vld [vmem:[#allocation9 + $0xe4] ss:$8 sps:$4 sm:$0xff]   ;;  %p1759_p3 = por %p1758_p2, %p1757_p1 }
  0x99   :  { %1034 = vmatprep.subr.bf16.mxu0 %v1510_v42  ;;  %v1489_v28 = vld [vmem:[#allocation6 + $0x1a8] ss:$16 sps:$4 sm:$0xff]   ;;  %v1947_v42 = vld [vmem:[#allocation8] sm:$0xf] }
  0x9a   :  { %v1492_v30 = vld [vmem:[#allocation6 + $0x1c8] ss:$16 sps:$4 sm:$0xff]   ;;  %p1760_p4 = pnand %p1759_p3, %p1753_p0 }
  0x9b   :  { %555 = vmatpush1.bf16.msra.mxu1 %v1423_v18  ;;  %v1474_v18 = vld [vmem:[#allocation6 + $0x108] ss:$16 sps:$4 sm:$0xff]  }
  0x9c   :  { %556 = vmatprep.subr.bf16.mxu1 %v1424_v19  ;;  %1035 = vmatpush1.bf16.msra.mxu0 %v1512_v44  ;;  %v1479_v19 = vld [vmem:[#allocation6 + $0x12c] ss:$16 sps:$4 sm:$0xff]   ;;  %v1495_v32 = vld [vmem:[#allocation6 + $0x1e8] ss:$16 sps:$4 sm:$0xff]  }
  0x9d   :  { %1036 = vmatprep.subr.bf16.mxu0 %v1513_v46  ;;  %v1548_v38 = vld [vmem:[#allocation9 + $0x104] ss:$8 sps:$4 sm:$0xff]  }
  0x9f   :  { %557 = vmatpush1.bf16.msra.mxu1 %v1426_v20  ;;  %v1477_v20 = vld [vmem:[#allocation6 + $0x128] ss:$16 sps:$4 sm:$0xff]  }
  0xa0   :  { %558 = vmatprep.subr.bf16.mxu1 %v1427_v21  ;;  %1037 = vmatpush1.bf16.msra.mxu0 %v1515_v50  ;;  %v1482_v21 = vld [vmem:[#allocation6 + $0x14c] ss:$16 sps:$4 sm:$0xff]  }
  0xa1   :  { %1038 = vmatprep.subr.bf16.mxu0 %v1516_v51 }
  0xa3   :  { %559 = vmatpush1.bf16.msra.mxu1 %v1429_v22  ;;  %v1480_v22 = vld [vmem:[#allocation6 + $0x148] ss:$16 sps:$4 sm:$0xff]  }
  0xa4   :  { %560 = vmatprep.subr.bf16.mxu1 %v1430_v23  ;;  %1039 = vmatpush1.bf16.msra.mxu0 %v1518_v54  ;;  %v1485_v23 = vld [vmem:[#allocation6 + $0x16c] ss:$16 sps:$4 sm:$0xff]  }
  0xa5   :  { %1040 = vmatprep.subr.bf16.mxu0 %v1519_v55 }
  0xa7   :  { %561 = vmatpush1.bf16.msra.mxu1 %v1432_v24  ;;  %v1483_v24 = vld [vmem:[#allocation6 + $0x168] ss:$16 sps:$4 sm:$0xff]  }
  0xa8   :  { %562 = vmatprep.subr.bf16.mxu1 %v1433_v25  ;;  %1041 = vmatpush1.bf16.msra.mxu0 %v1521_v58  ;;  %v1488_v25 = vld [vmem:[#allocation6 + $0x18c] ss:$16 sps:$4 sm:$0xff]  }
  0xa9   :  { %1042 = vmatprep.subr.bf16.mxu0 %v1522_v59 }
  0xab   :  { %563 = vmatpush1.bf16.msra.mxu1 %v1435_v26  ;;  %v1486_v26 = vld [vmem:[#allocation6 + $0x188] ss:$16 sps:$4 sm:$0xff]  }
  0xac   :  { %564 = vmatprep.subr.bf16.mxu1 %v1436_v27  ;;  %1043 = vmatpush1.bf16.msra.mxu0 %v1524_v62  ;;  %v1491_v27 = vld [vmem:[#allocation6 + $0x1ac] ss:$16 sps:$4 sm:$0xff]  }
  0xad   :  { %1044 = vmatprep.subr.bf16.mxu0 %v1525_v63  ;;  %v1549_v62 = vld [vmem:[#allocation9 + $0x110] ss:$8 sps:$4 sm:$0xff]   ;;  %v1554_v63 = vld [vmem:[#allocation9 + $0x124] ss:$8 sps:$4 sm:$0xff]  }
  0xaf   :  { %565 = vmatpush1.bf16.msra.mxu1 %v1438_v31  ;;  %v1497_v31 = vld [vmem:[#allocation6 + $0x1ec] ss:$16 sps:$4 sm:$0xff]  }
  0xb0   :  { %566 = vmatprep.subr.bf16.mxu1 %v1439_v33  ;;  %1045 = vmatpush1.bf16.msra.mxu0 %v1527_v2  ;;  %v1539_v33 = vld [vmem:[#allocation9 + $0xd0] ss:$8 sps:$4 sm:$0xff]  }
  0xb1   :  { %1046 = vmatprep.subr.bf16.mxu0 %v1528_v3  ;;  %v1555_v2 = vld [vmem:[#allocation9 + $0x130] ss:$8 sps:$4 sm:$0xff]   ;;  %v1560_v3 = vld [vmem:[#allocation9 + $0x144] ss:$8 sps:$4 sm:$0xff]  }
  0xb3   :  { %567 = vmatpush1.bf16.msra.mxu1 %v1441_v35  ;;  %v1542_v35 = vld [vmem:[#allocation9 + $0xe0] ss:$8 sps:$4 sm:$0xff]  }
  0xb4   :  { %568 = vmatprep.subr.bf16.mxu1 %v1442_v37  ;;  %1047 = vmatpush1.bf16.msra.mxu0 %v1530_v6  ;;  %v1545_v37 = vld [vmem:[#allocation9 + $0xf0] ss:$8 sps:$4 sm:$0xff]  }
  0xb5   :  { %1048 = vmatprep.subr.bf16.mxu0 %v1531_v7  ;;  %v1561_v6 = vld [vmem:[#allocation9 + $0x150] ss:$8 sps:$4 sm:$0xff]   ;;  %v1566_v7 = vld [vmem:[#allocation9 + $0x164] ss:$8 sps:$4 sm:$0xff]  }
  0xb7   :  { %569 = vmatpush1.bf16.msra.mxu1 %v1444_v39  ;;  %v190_v39 = vlaneseq }
  0xb8   :  { %570 = vmatprep.subr.bf16.mxu1 %v1445_v41  ;;  %1049 = vmatpush1.bf16.msra.mxu0 %v1533_v10  ;;  %v1567_v10 = vld [vmem:[#allocation9 + $0x170] ss:$8 sps:$4 sm:$0xff]  }
  0xb9   :  { %1050 = vmatprep.subr.bf16.mxu0 %v1534_v11  ;;  %v1942_v40 = vshrl.u32 %v190_v39, 7  ;;  %v1572_v11 = vld [vmem:[#allocation9 + $0x184] ss:$8 sps:$4 sm:$0xff]  }
  0xbb   :  { %571 = vmatpush1.bf16.msra.mxu1 %v1447_v43  ;;  %v1945_v41 = vsub.s32 0, %v1942_v40  ;;  %v1950_v43 = vsub.s32 1, %v1942_v40 }
  0xbc   :  { %583 = vmatprep.subr.bf16.mxu1 %v1452_v45  ;;  %1051 = vmatpush1.bf16.msra.mxu0 %v1536_v16  ;;  %v1573_v16 = vld [vmem:[#allocation9 + $0x190] ss:$8 sps:$4 sm:$0xff]  }
  0xbd   :  { %1052 = vmatprep.subr.bf16.mxu0 %v1537_v17  ;;  %v193_v44 = vrot.slane %v1947_v42, %v1945_v41  ;;  %v197_v45 = vrot.slane %v1947_v42, %v1950_v43  ;;  %v1578_v17 = vld [vmem:[#allocation9 + $0x1a4] ss:$8 sps:$4 sm:$0xff]  }
  0xbe   :  { %573 = vmatmul.mubr.bf16.vlgmr.msra.gmra.mrb[0].mxu1 %v1937_v48 }
  0xbf   :  { %584 = vmatpush1.bf16.msra.mxu1 %v1450_v47  ;;  %615 = vmatprep.mubr.bf16.mxu1 %v1932_v15  ;;  %v1476_v15 = vld [vmem:[#allocation6 + $0x10c] ss:$16 sps:$4 sm:$0xff]  }
  0xc0   :  { %585 = vmatprep.subr.bf16.mxu1 %v1455_v49  ;;  %1053 = vmatpush1.bf16.msra.mxu0 %v1539_v33 }
  0xc1   :  { %1054 = vmatprep.subr.bf16.mxu0 %v1540_v34  ;;  %v1593_v34 = vld [vmem:[#allocation9 + $0x1f4] ss:$8 sps:$4 sm:$0xff]  }
  0xc3   :  { %586 = vmatpush1.bf16.msra.mxu1 %v1453_v52 }
  0xc4   :  { %587 = vmatprep.subr.bf16.mxu1 %v1458_v53  ;;  %1055 = vmatpush1.bf16.msra.mxu0 %v1542_v35 }
  0xc5   :  { %1056 = vmatprep.subr.bf16.mxu0 %v1543_v36 }
  0xc7   :  { %588 = vmatpush1.bf16.msra.mxu1 %v1456_v56 }
  0xc8   :  { %589 = vmatprep.subr.bf16.mxu1 %v1461_v57  ;;  %1057 = vmatpush1.bf16.msra.mxu0 %v1545_v37 }
  0xc9   :  { %1069 = vmatprep.subr.bf16.mxu0 %v1548_v38 }
  0xcb   :  { %590 = vmatpush1.bf16.msra.mxu1 %v1459_v60  ;;  %v1546_v60 = vld [vmem:[#allocation9 + $0x100] ss:$8 sps:$4 sm:$0xff]  }
  0xcc   :  { %591 = vmatprep.subr.bf16.mxu1 %v1464_v61  ;;  %v1551_v61 = vld [vmem:[#allocation9 + $0x114] ss:$8 sps:$4 sm:$0xff]  }
  0xcf   :  { %592 = vmatpush1.bf16.msra.mxu1 %v1462_v0  ;;  %v1552_v0 = vld [vmem:[#allocation9 + $0x120] ss:$8 sps:$4 sm:$0xff]  }
  0xd0   :  { %593 = vmatprep.subr.bf16.mxu1 %v1467_v1  ;;  %v1557_v1 = vld [vmem:[#allocation9 + $0x134] ss:$8 sps:$4 sm:$0xff]  }
  0xd3   :  { %594 = vmatpush1.bf16.msra.mxu1 %v1465_v4  ;;  %v1558_v4 = vld [vmem:[#allocation9 + $0x140] ss:$8 sps:$4 sm:$0xff]  }
  0xd4   :  { %595 = vmatprep.subr.bf16.mxu1 %v1470_v5  ;;  %v1563_v5 = vld [vmem:[#allocation9 + $0x154] ss:$8 sps:$4 sm:$0xff]  }
  0xd7   :  { %596 = vmatpush1.bf16.msra.mxu1 %v1468_v8  ;;  %v1564_v8 = vld [vmem:[#allocation9 + $0x160] ss:$8 sps:$4 sm:$0xff]  }
  0xd8   :  { %597 = vmatprep.subr.bf16.mxu1 %v1473_v9  ;;  %v1569_v9 = vld [vmem:[#allocation9 + $0x174] ss:$8 sps:$4 sm:$0xff]  }
  0xdb   :  { %598 = vmatpush1.bf16.msra.mxu1 %v1471_v12  ;;  %v1570_v12 = vld [vmem:[#allocation9 + $0x180] ss:$8 sps:$4 sm:$0xff]  }
  0xdc   :  { %599 = vmatprep.subr.bf16.mxu1 %v1476_v15  ;;  %v1575_v15 = vld [vmem:[#allocation9 + $0x194] ss:$8 sps:$4 sm:$0xff]  }
  0xdf   :  { %600 = vmatpush1.bf16.msra.mxu1 %v1474_v18  ;;  %v1576_v18 = vld [vmem:[#allocation9 + $0x1a0] ss:$8 sps:$4 sm:$0xff]  }
  0xe0   :  { %601 = vmatprep.subr.bf16.mxu1 %v1479_v19  ;;  %v1581_v19 = vld [vmem:[#allocation9 + $0x1b4] ss:$8 sps:$4 sm:$0xff]  }
  0xe3   :  { %602 = vmatpush1.bf16.msra.mxu1 %v1477_v20  ;;  %v1579_v20 = vld [vmem:[#allocation9 + $0x1b0] ss:$8 sps:$4 sm:$0xff]  }
  0xe4   :  { %603 = vmatprep.subr.bf16.mxu1 %v1482_v21  ;;  %v1584_v21 = vld [vmem:[#allocation9 + $0x1c4] ss:$8 sps:$4 sm:$0xff]  }
  0xe7   :  { %604 = vmatpush1.bf16.msra.mxu1 %v1480_v22  ;;  %v1582_v22 = vld [vmem:[#allocation9 + $0x1c0] ss:$8 sps:$4 sm:$0xff]  }
  0xe8   :  { %605 = vmatprep.subr.bf16.mxu1 %v1485_v23  ;;  %v1587_v23 = vld [vmem:[#allocation9 + $0x1d4] ss:$8 sps:$4 sm:$0xff]  }
  0xeb   :  { %606 = vmatpush1.bf16.msra.mxu1 %v1483_v24  ;;  %v200_v24 = vsub.s32 2, %v1942_v40 }
  0xec   :  { %607 = vmatprep.subr.bf16.mxu1 %v1488_v25  ;;  %v204_v25 = vsub.s32 3, %v1942_v40  ;;  %v1591_v40 = vld [vmem:[#allocation9 + $0x1f0] ss:$8 sps:$4 sm:$0xff]  }
  0xef   :  { %608 = vmatpush1.bf16.msra.mxu1 %v1486_v26  ;;  %v1585_v26 = vld [vmem:[#allocation9 + $0x1d0] ss:$8 sps:$4 sm:$0xff]  }
  0xf0   :  { %609 = vmatprep.subr.bf16.mxu1 %v1491_v27  ;;  %v201_v27 = vrot.slane %v1947_v42, %v200_v24 }
  0xf3   :  { %610 = vmatpush1.bf16.msra.mxu1 %v1489_v28  ;;  %v1590_v28 = vld [vmem:[#allocation9 + $0x1e4] ss:$8 sps:$4 sm:$0xff]  }
  0xf4   :  { %611 = vmatprep.subr.bf16.mxu1 %v1494_v29  ;;  %v205_v29 = vrot.slane %v1947_v42, %v204_v25 }
  0xf7   :  { %612 = vmatpush1.bf16.msra.mxu1 %v1492_v30 }
  0xf8   :  { %613 = vmatprep.subr.bf16.mxu1 %v1497_v31  ;;  %v1588_v31 = vld [vmem:[#allocation9 + $0x1e0] ss:$8 sps:$4 sm:$0xff]  }
  0xfb   :  { %614 = vmatpush1.bf16.msra.mxu1 %v1495_v32 }
  0xfe   :  { %616 = vmatmul.mubr.bf16.vlgmr.msra.gmra.mrb[4].mxu1 %v1937_v48 }
 0x191   :  { %v574_v46 = vpop.f32.mrb[0].mxu1 }
 0x192   :  { %v575_v47 = vadd.f32 %v574_v46, %v193_v44  ;;  %v576_v48 = vpop.f32.mrb[1].mxu1 }
 0x193   :  { %v577_v49 = vadd.f32 %v576_v48, %v197_v45  ;;  %v578_v50 = vpop.f32.mrb[2].mxu1 }
 0x194   :  { %v626_v51 = vmax.f32 %v575_v47, 0.0  ;;  %v579_v52 = vadd.f32 %v578_v50, %v193_v44  ;;  %v580_v53 = vpop.f32.mrb[3].mxu1  ;;  %v1123_v50 = vunpack.c.l.bf16 %v1926_v13 }
 0x195   :  { %v581_v54 = vadd.f32 %v580_v53, %v197_v45  ;;  %v627_v56 = vmax.f32 %v577_v49, 0.0  ;;  %v1135_v49 = vld [vmem:[#allocation11] sm:$0x3] }
 0x196   :  { %v630_v55 = vmax.f32 %v579_v52, 0.0  ;;  %v1125_v52 = vunpack.c.l.bf16 %v1928_v14  ;;  %v1140_v53 = vrot.slane %v1135_v49, %v1945_v41 }
 0x197   :  { %v631_v57 = vmax.f32 %v581_v54, 0.0 }
 0x198   :  { %v634_v58 = vpack.c.bf16 %v630_v55, %v626_v51  ;;  %v1124_v51 = vunpack.c.h.bf16 %v1926_v13  ;;  %v1126_v55 = vunpack.c.h.bf16 %v1928_v14 }
 0x199   :  { %v635_v59 = vpack.c.bf16 %v631_v57, %v627_v56  ;;  %v1144_v56 = vrot.slane %v1135_v49, %v1950_v43 }
 0x19b   :  { %1058 = vmatprep.mubr.bf16.mxu0 %v635_v59 }
 0x19c   :  { %1059 = vmatmul.mubr.bf16.vlgmr.msra.gmra.mrb[0].mxu0 %v634_v58 }
 0x19d   :  { %1070 = vmatpush1.bf16.msra.mxu0 %v1546_v60 }
 0x19e   :  { %1071 = vmatprep.subr.bf16.mxu0 %v1551_v61 }
 0x1a1   :  { %1072 = vmatpush1.bf16.msra.mxu0 %v1549_v62 }
 0x1a2   :  { %1073 = vmatprep.subr.bf16.mxu0 %v1554_v63 }
 0x1a5   :  { %1074 = vmatpush1.bf16.msra.mxu0 %v1552_v0 }
 0x1a6   :  { %1075 = vmatprep.subr.bf16.mxu0 %v1557_v1 }
 0x1a9   :  { %1076 = vmatpush1.bf16.msra.mxu0 %v1555_v2 }
 0x1aa   :  { %1077 = vmatprep.subr.bf16.mxu0 %v1560_v3 }
 0x1ad   :  { %1078 = vmatpush1.bf16.msra.mxu0 %v1558_v4 }
 0x1ae   :  { %1079 = vmatprep.subr.bf16.mxu0 %v1563_v5 }
 0x1b1   :  { %1080 = vmatpush1.bf16.msra.mxu0 %v1561_v6 }
 0x1b2   :  { %1081 = vmatprep.subr.bf16.mxu0 %v1566_v7 }
 0x1b5   :  { %1082 = vmatpush1.bf16.msra.mxu0 %v1564_v8 }
 0x1b6   :  { %1083 = vmatprep.subr.bf16.mxu0 %v1569_v9 }
 0x1b9   :  { %1084 = vmatpush1.bf16.msra.mxu0 %v1567_v10 }
 0x1ba   :  { %1085 = vmatprep.subr.bf16.mxu0 %v1572_v11 }
 0x1bd   :  { %1086 = vmatpush1.bf16.msra.mxu0 %v1570_v12 }
 0x1be   :  { %1087 = vmatprep.subr.bf16.mxu0 %v1575_v15 }
 0x1c1   :  { %1088 = vmatpush1.bf16.msra.mxu0 %v1573_v16 }
 0x1c2   :  { %1089 = vmatprep.subr.bf16.mxu0 %v1578_v17 }
 0x1c5   :  { %1090 = vmatpush1.bf16.msra.mxu0 %v1576_v18 }
 0x1c6   :  { %1091 = vmatprep.subr.bf16.mxu0 %v1581_v19 }
 0x1c9   :  { %1092 = vmatpush1.bf16.msra.mxu0 %v1579_v20 }
 0x1ca   :  { %1093 = vmatprep.subr.bf16.mxu0 %v1584_v21 }
 0x1cd   :  { %1094 = vmatpush1.bf16.msra.mxu0 %v1582_v22 }
 0x1ce   :  { %1095 = vmatprep.subr.bf16.mxu0 %v1587_v23 }
 0x1d1   :  { %v617_v30 = vpop.f32.mrb[4].mxu1  ;;  %1096 = vmatpush1.bf16.msra.mxu0 %v1585_v26  ;;  %v1151_v26 = vld [vmem:[#allocation12] sm:$0x3] }
 0x1d2   :  { %v618_v32 = vadd.f32 %v617_v30, %v201_v27  ;;  %v619_v33 = vpop.f32.mrb[5].mxu1  ;;  %1097 = vmatprep.subr.bf16.mxu0 %v1590_v28  ;;  %v1190_v28 = vrot.slane %v1151_v26, %v1945_v41 }
 0x1d3   :  { %v620_v35 = vadd.f32 %v619_v33, %v205_v29  ;;  %v621_v36 = vpop.f32.mrb[6].mxu1 }
 0x1d4   :  { %v622_v37 = vadd.f32 %v621_v36, %v201_v27  ;;  %v623_v38 = vpop.f32.mrb[7].mxu1  ;;  %v628_v44 = vmax.f32 %v618_v32, 0.0  ;;  %v1152_v27 = vld [vmem:[#allocation14] sm:$0x3] }
 0x1d5   :  { %v624_v39 = vadd.f32 %v623_v38, %v205_v29  ;;  %1098 = vmatpush1.bf16.msra.mxu0 %v1588_v31  ;;  %v629_v46 = vmax.f32 %v620_v35, 0.0  ;;  %v1194_v29 = vrot.slane %v1151_v26, %v1950_v43  ;;  %v1205_v33 = vrot.slane %v1152_v27, %v1945_v41 }
 0x1d6   :  { %v632_v45 = vmax.f32 %v622_v37, 0.0  ;;  %1099 = vmatprep.subr.bf16.mxu0 %v1593_v34  ;;  %v1209_v34 = vrot.slane %v1152_v27, %v1950_v43 }
 0x1d7   :  { %v633_v47 = vmax.f32 %v624_v39, 0.0 }
 0x1d8   :  { %v636_v42 = vpack.c.bf16 %v632_v45, %v628_v44 }
 0x1d9   :  { %v637_v48 = vpack.c.bf16 %v633_v47, %v629_v46  ;;  %1100 = vmatpush1.bf16.msra.mxu0 %v1591_v40 }
 0x1db   :  { %1101 = vmatprep.mubr.bf16.mxu0 %v637_v48 }
 0x1dc   :  { %1102 = vmatmul.mubr.bf16.vlgmr.msra.gmra.mrb[0].mxu0 %v636_v42 }
 0x2af   :  { %v1103_v54 = vpop.f32.mrb[0].mxu0 }
 0x2b0   :  { %v1131_v57 = vadd.f32 %v1123_v50, %v1103_v54  ;;  %v1105_v58 = vpop.f32.mrb[1].mxu0 }
 0x2b1   :  { %v1132_v59 = vadd.f32 %v1124_v51, %v1105_v58  ;;  %v1107_v60 = vpop.f32.mrb[2].mxu0 }
 0x2b2   :  { %v1133_v61 = vadd.f32 %v1125_v52, %v1107_v60  ;;  %v1109_v62 = vpop.f32.mrb[3].mxu0  ;;  %v1147_v63 = vadd.f32 %v1140_v53, %v1131_v57 }
 0x2b3   :  { %v1134_v0 = vadd.f32 %v1126_v55, %v1109_v62  ;;  %v1148_v1 = vadd.f32 %v1144_v56, %v1132_v59 }
 0x2b4   :  { %v1149_v2 = vadd.f32 %v1140_v53, %v1133_v61 }
 0x2b5   :  { %v1150_v13 = vadd.f32 %v1144_v56, %v1134_v0  ;;  %v1153_v3 = vadd.f32 %v1148_v1, %v1147_v63 }
 0x2b7   :  { %1154 = vadd.xlane.f32.xlu0 %v1153_v3  ;;  %v1156_v4 = vadd.f32 %v1150_v13, %v1149_v2 }
 0x2bb   :  { %1157 = vadd.xlane.f32.xlu0 %v1156_v4 }
 0x344   :  { %v1155_v5 = vpop.xlane.xlu0 %1154 }
 0x345   :  { %v1160_v6 = vmul.f32 0.00390625, %v1155_v5 }
 0x347   :  { %v1162_v14 = vsub.f32 %v1147_v63, %v1160_v6  ;;  %v1163_v7 = vsub.f32 %v1148_v1, %v1160_v6 }
 0x348   :  { %v1158_v8 = vpop.xlane.xlu0 %1157 }
 0x349   :  { %v1161_v9 = vmul.f32 0.00390625, %v1158_v8  ;;  %v1166_v10 = vmul.f32 %v1162_v14, %v1162_v14  ;;  %v1167_v11 = vmul.f32 %v1163_v7, %v1163_v7 }
 0x34b   :  { %v1164_v12 = vsub.f32 %v1149_v2, %v1161_v9  ;;  %v1165_v15 = vsub.f32 %v1150_v13, %v1161_v9  ;;  %v1170_v16 = vadd.f32 %v1167_v11, %v1166_v10 }
 0x34d   :  { %1171 = vadd.xlane.f32.xlu1 %v1170_v16  ;;  %v1168_v17 = vmul.f32 %v1164_v12, %v1164_v12  ;;  %v1169_v18 = vmul.f32 %v1165_v15, %v1165_v15 }
 0x34f   :  { %v1173_v19 = vadd.f32 %v1169_v18, %v1168_v17 }
 0x351   :  { %1174 = vadd.xlane.f32.xlu1 %v1173_v19 }
 0x3da   :  { %v1172_v20 = vpop.xlane.xlu1 %1171 }
 0x3db   :  { %v1176_v21 = vmul.f32 0.00390625, %v1172_v20 }
 0x3dd   :  { %v1178_v22 = vadd.f32 1e-05, %v1176_v21 }
 0x3de   :  { %v1175_v23 = vpop.xlane.xlu1 %1174 }
 0x3df   :  { %1594 = vrsqrt.f32 %v1178_v22  ;;  %v1177_v24 = vmul.f32 0.00390625, %v1175_v23 }
 0x3e1   :  { %v1179_v25 = vadd.f32 1e-05, %v1177_v24 }
 0x3e3   :  { %1596 = vrsqrt.f32 %v1179_v25 }
 0x3e9   :  { %v1595_v30 = vpop.eup %1594 }
 0x3ea   :  { %v1182_v31 = vmul.f32 %v1595_v30, %v1162_v14  ;;  %v1183_v32 = vmul.f32 %v1595_v30, %v1163_v7 }
 0x3ec   :  { %v1197_v35 = vmul.f32 %v1190_v28, %v1182_v31  ;;  %v1198_v36 = vmul.f32 %v1194_v29, %v1183_v32 }
 0x3ed   :  { %v1597_v37 = vpop.eup %1596 }
 0x3ee   :  { %v1184_v38 = vmul.f32 %v1597_v37, %v1164_v12  ;;  %v1185_v39 = vmul.f32 %v1597_v37, %v1165_v15  ;;  %v1212_v40 = vadd.f32 %v1205_v33, %v1197_v35  ;;  %v1213_v44 = vadd.f32 %v1209_v34, %v1198_v36 }
 0x3f0   :  { %v1199_v45 = vmul.f32 %v1190_v28, %v1184_v38  ;;  %v1200_v46 = vmul.f32 %v1194_v29, %v1185_v39  ;;  %v1382_v47 = vpack.c.bf16 %v1213_v44, %v1212_v40 }
 0x3f2   :  { %v1214_v42 = vadd.f32 %v1205_v33, %v1199_v45  ;;  %v1215_v48 = vadd.f32 %v1209_v34, %v1200_v46  ;;  %1228 = vst [vmem:[#allocation15] sm:$0xff] %v1382_v47 }
 0x3f4   :  { %v1383_v49 = vpack.c.bf16 %v1215_v48, %v1214_v42 }
 0x3f6   :  { %1229 = vst [vmem:[#allocation15 + $0x8] sm:$0xff] %v1383_v49 }
 0x3f7   :  { %1763 = shalt.err (!%p1760_p4)
}
 0x3f8   :  { %s1764_s16 = scalar_lea.hbm %s1992_s7, 256 }
 0x3f9   :  { %p1765_p5 = scmp.ne.s32.totalorder %s1992_s7, %s1764_s16  ;;  %p1768_p6 = scmp.lt.u32.totalorder %s1764_s16, %s1992_s7 }
 0x3fb   :  { %p1770_p7 = pnand %p1768_p6, %p1765_p5 }
 0x3fd   :  { %1773 = shalt.err (!%p1770_p7)
}
 0x3fe   :  { %1241 = dma.vmem_to_hbm [thread:$0]  %s1236_s14, 256, %s1992_s7, [#allocation5], %s1789_s25, %s1789_s25, %s1790_s27  }
 0x3ff   :  { %1782 = dma.done.wait [#allocation5], 256  }
 0x400   :  { %1783 = vsyncadd [#allocation5], 4294967040 }
 0x401   :  { %1245 = vsyncpa [#allocation4], 1 }
 0x402   :  { %1246 = vsyncpa [#allocation7], 1 }
 0x403   :  { %1247 = vsyncpa [#allocation10], 1 }
 0x404   :  { %1248 = vsyncpa [#allocation13], 1 }
 0x405   :  { %1249 = vsyncpa [#allocation5], 1 }

// kernel: generator_forward.5
= control target key start
LH: loop header
LB: loop body
LE: loop exit
PB: predicated region body
PF: predicated region fallthrough
CT: control target
= control target key end

     0   :  { %s3098_s0 = inlined_call_operand.hbm [shape: bf16[2,8,256], index: 0, kind: input, shape index: {}]   ;;  %s3099_s1 = inlined_call_operand.hbm [shape: f32[8,8], index: 1, kind: input, shape index: {}]   ;;  %s3100_s2 = inlined_call_operand.hbm [shape: bf16[256,768], index: 2, kind: input, shape index: {}]   ;;  %s3101_s3 = inlined_call_operand.hbm [shape: f32[1,768], index: 3, kind: input, shape index: {}]   ;;  %s3102_s4 = inlined_call_operand.hbm [shape: bf16[256,256], index: 4, kind: input, shape index: {}]   ;;  %s3103_s5 = inlined_call_operand.hbm [shape: f32[1,256], index: 5, kind: input, shape index: {}]   ;;  %s3104_s6 = inlined_call_operand.hbm [shape: f32[1,256], index: 6, kind: input, shape index: {}]   ;;  %s3105_s7 = inlined_call_operand.hbm [shape: f32[1,256], index: 7, kind: input, shape index: {}]   ;;  %s3106_s8 = inlined_call_operand.hbm [shape: bf16[2,8,256], index: 8, kind: output, shape index: {}]  }
   0x1   :  { %3110 = sst [smem:[#allocation23_spill]] %s3099_s1 }
   0x2   :  { %3111 = sst [smem:[#allocation24_spill]] %s3100_s2 }
   0x3   :  { %13 = vsyncpa [#allocation3], 0 }
   0x4   :  { %15 = vsyncpa [#allocation3 + $0x1], 0 }
   0x5   :  { %16 = vsyncpa [#allocation6], 0 }
   0x6   :  { %17 = vsyncpa [#allocation9], 0 }
   0x7   :  { %18 = vsyncpa [#allocation12], 0 }
   0x8   :  { %19 = vsyncpa [#allocation15], 0 }
   0x9   :  { %20 = vsyncpa [#allocation4], 0 }
   0xa   :  { %22 = vsyncpa [#allocation4 + $0x1], 0  ;;  %s2709_s27 = smov 0   ;;  %s2711_s28 = smov 0  }
   0xb   :  { %s2713_s29 = smov 0   ;;  %s2715_s30 = smov 0  }
   0xc LB: > { %s2649_s9 = smov [#allocation5]   ;;  %s2730_s11 = sadd.s32 4294967295, %s2647_s30   ;;  %s2647_s30 = sphi %s2715_s30, %s3137_s30   ;;  %s2643_s29 = sphi %s2713_s29, %s3136_s29   ;;  %s2639_s28 = sphi %s2711_s28, %s3135_s28   ;;  %s2635_s27 = sphi %s2709_s27, %s3134_s27  }
   0xd   : > { %s245_s10 = sshll.u32 %s2649_s9, 4  ;;  %p1817_p0 = scmp.ge.s32.totalorder %s2647_s30, 1  ;;  %s2735_s10 = int_to_ptr.vmem [resolvable:$true] %s245_s10 }
   0xe   : > { %p3107_p1 = scmp.eq.s32.totalorder %s2730_s11, 0  ;;  %p232_p2 = scmp.lt.s32.totalorder %s2647_s30, 3 }
   0xf   : > { %s2650_s13 = smov [#allocation8]   ;;  %s2651_s15 = smov [#allocation11]  }
  0x10   : > { %p2737_p3 = pnand %p1817_p0, %p232_p2  ;;  %s269_s14 = sshll.u32 %s2650_s13, 4  ;;  %s2744_s14 = int_to_ptr.vmem [resolvable:$true] %s269_s14 }
  0x11   : > { %s293_s16 = sshll.u32 %s2651_s15, 4  ;;  %s2652_s18 = smov [#allocation7]   ;;  %s2752_s16 = int_to_ptr.vmem [resolvable:$true] %s293_s16 }
  0x12   : > { %s3112_s12 = scalar_select %p2737_p3, 1, 0 }
  0x13   : > { %p2044_p5 = pneg %p2737_p3  ;;  %s2754_s19 = sshll.u32 %s2652_s18, 4  ;;  %s256_s19 = int_to_ptr.vmem [resolvable:$true] %s2754_s19 }
  0x14   : > { %s3114_s1 = sld [smem:[#allocation23_spill]] }
  0x15   : > { %p2748_p6 = pnand %p2044_p5, %p3107_p1 }
  0x17   : > { %p2764_p8 = pneg %p2748_p6 }
  0x1a   : > { %s2339_s22 = scalar_lea.hbm %s3114_s1, 128 }
  0x1b   : > { %p2340_p7 = scmp.ne.s32.totalorder %s3114_s1, %s2339_s22  ;;  %p2346_p11 = scmp.lt.u32.totalorder %s2339_s22, %s3114_s1 }
  0x1d   : > { %p2342_p9 = pnand %p2764_p8, %p2340_p7 }
  0x1f   : > { %p2343_p10 = pneg %p2342_p9 }
  0x21   : > { %p2348_p12 = pnand %p2346_p11, %p2343_p10 }
  0x23   : > { %2351 = shalt.err (!%p2348_p12)
}
  0x24   : > { %s2352_s13 = scalar_lea.vmem %s2735_s10, 128  ;;  %p2360_p5 = scmp.lt.s32.totalorder %s2735_s10, %s2735_s10 }
  0x25   : > { %p2353_p13 = scmp.ne.s32.totalorder %s2735_s10, %s2352_s13  ;;  %p2361_p4 = scmp.lt.s32.totalorder %s2352_s13, %s2352_s13 }
  0x27   : > { %p2355_p0 = pnand %p2353_p13, %p2764_p8  ;;  %p2362_p7 = por %p2361_p4, %p2360_p5 }
  0x29   : > { %p2356_p2 = pneg %p2355_p0 }
  0x2b   : > { %p2363_p9 = pnand %p2362_p7, %p2356_p2 }
  0x2d   : > { %2366 = shalt.err (!%p2363_p9)
}
  0x2e   : > { %2047 = dma.hbm_to_vmem [thread:$0]  (!%p2748_p6), %s3114_s1, 128, %s2735_s10, [#allocation6]  }
  0x2f   : > { %s2367_s22 = scalar_lea.hbm %s3101_s3, 96 }
  0x30   : > { %p2368_p10 = scmp.ne.s32.totalorder %s3101_s3, %s2367_s22  ;;  %p2374_p12 = scmp.lt.u32.totalorder %s2367_s22, %s3101_s3 }
  0x32   : > { %p2370_p4 = pnand %p2368_p10, %p2764_p8 }
  0x34   : > { %p2371_p11 = pneg %p2370_p4 }
  0x36   : > { %p2376_p13 = pnand %p2374_p12, %p2371_p11 }
  0x38   : > { %2379 = shalt.err (!%p2376_p13)
}
  0x39   : > { %s2380_s10 = scalar_lea.vmem %s2744_s14, 96  ;;  %p2388_p7 = scmp.lt.s32.totalorder %s2744_s14, %s2744_s14 }
  0x3a   : > { %p2381_p0 = scmp.ne.s32.totalorder %s2744_s14, %s2380_s10  ;;  %p2389_p9 = scmp.lt.s32.totalorder %s2380_s10, %s2380_s10 }
  0x3c   : > { %p2383_p2 = pnand %p2381_p0, %p2764_p8  ;;  %p2390_p10 = por %p2389_p9, %p2388_p7 }
  0x3e   : > { %p2384_p5 = pneg %p2383_p2 }
  0x40   : > { %p2391_p4 = pnand %p2390_p10, %p2384_p5 }
  0x42   : > { %2394 = shalt.err (!%p2391_p4)
}
  0x43   : > { %2053 = dma.hbm_to_vmem [thread:$0]  (!%p2748_p6), %s3101_s3, 96, %s2744_s14, [#allocation9]  }
  0x44   : > { %s2395_s21 = scalar_lea.hbm %s3103_s5, 32 }
  0x45   : > { %p2396_p11 = scmp.ne.s32.totalorder %s3103_s5, %s2395_s21  ;;  %p2402_p0 = scmp.lt.u32.totalorder %s2395_s21, %s3103_s5 }
  0x47   : > { %p2398_p12 = pnand %p2396_p11, %p2764_p8 }
  0x49   : > { %p2399_p13 = pneg %p2398_p12 }
  0x4b   : > { %p2404_p2 = pnand %p2402_p0, %p2399_p13 }
  0x4d   : > { %2407 = shalt.err (!%p2404_p2)
}
  0x4e   : > { %s2408_s14 = scalar_lea.vmem %s2752_s16, 32  ;;  %p2416_p10 = scmp.lt.s32.totalorder %s2752_s16, %s2752_s16 }
  0x4f   : > { %p2409_p5 = scmp.ne.s32.totalorder %s2752_s16, %s2408_s14  ;;  %p2417_p4 = scmp.lt.s32.totalorder %s2408_s14, %s2408_s14 }
  0x51   : > { %p2411_p7 = pnand %p2409_p5, %p2764_p8  ;;  %p2418_p11 = por %p2417_p4, %p2416_p10 }
  0x53   : > { %p2412_p9 = pneg %p2411_p7 }
  0x55   : > { %p2419_p12 = pnand %p2418_p11, %p2412_p9 }
  0x57   : > { %2422 = shalt.err (!%p2419_p12)
}
  0x58   : > { %2059 = dma.hbm_to_vmem [thread:$0]  (!%p2748_p6), %s3103_s5, 32, %s2752_s16, [#allocation12]  }
  0x59   : > { %s3116_s2 = sld [smem:[#allocation24_spill]] }
  0x5f   : > { %s2423_s18 = scalar_lea.hbm %s3116_s2, 12288 }
  0x60   : > { %p2424_p13 = scmp.ne.s32.totalorder %s3116_s2, %s2423_s18  ;;  %p2430_p5 = scmp.lt.u32.totalorder %s2423_s18, %s3116_s2 }
  0x62   : > { %p2426_p0 = pnand %p2424_p13, %p2764_p8 }
  0x64   : > { %p2427_p2 = pneg %p2426_p0 }
  0x66   : > { %p2432_p7 = pnand %p2430_p5, %p2427_p2 }
  0x68   : > { %2435 = shalt.err (!%p2432_p7)
}
  0x69   : > { %s2436_s24 = scalar_lea.vmem %s256_s19, 12288  ;;  %p2444_p11 = scmp.lt.s32.totalorder %s256_s19, %s256_s19 }
  0x6a   : > { %p2437_p9 = scmp.ne.s32.totalorder %s256_s19, %s2436_s24  ;;  %p2445_p12 = scmp.lt.s32.totalorder %s2436_s24, %s2436_s24 }
  0x6c   : > { %p2439_p10 = pnand %p2437_p9, %p2764_p8  ;;  %p2446_p1 = por %p2445_p12, %p2444_p11 }
  0x6e   : > { %p2440_p4 = pneg %p2439_p10 }
  0x70   : > { %p2447_p3 = pnand %p2446_p1, %p2440_p4 }
  0x72   : > { %2450 = shalt.err (!%p2447_p3)
}
  0x73   : > { %s2653_s16 = smov 384   ;;  %s2654_s26 = smov 24  }
  0x74   : > { %2050 = dma.hbm_to_vmem [thread:$0]  (!%p2748_p6), %s3116_s2, 12288, %s256_s19, [#allocation6], %s2653_s16, %s2653_s16, %s2654_s26  }
  0x75   : > { %s2655_s10 = smov [#allocation10]   ;;  %s2451_s20 = scalar_lea.hbm %s3102_s4, 4096 }
  0x76   : > { %s279_s13 = sshll.u32 %s2655_s10, 4  ;;  %p2452_p1 = scmp.ne.s32.totalorder %s3102_s4, %s2451_s20  ;;  %s280_s13 = int_to_ptr.vmem [resolvable:$true] %s279_s13 }
  0x77   : > { %p2458_p0 = scmp.lt.u32.totalorder %s2451_s20, %s3102_s4 }
  0x78   : > { %p2454_p3 = pnand %p2452_p1, %p2764_p8 }
  0x7a   : > { %p2455_p13 = pneg %p2454_p3 }
  0x7c   : > { %p2460_p2 = pnand %p2458_p0, %p2455_p13 }
  0x7e   : > { %2463 = shalt.err (!%p2460_p2)
}
  0x7f   : > { %s2464_s19 = scalar_lea.vmem %s280_s13, 4096  ;;  %p2472_p10 = scmp.lt.s32.totalorder %s280_s13, %s280_s13 }
  0x80   : > { %p2465_p5 = scmp.ne.s32.totalorder %s280_s13, %s2464_s19  ;;  %p2473_p4 = scmp.lt.s32.totalorder %s2464_s19, %s2464_s19 }
  0x82   : > { %p2467_p7 = pnand %p2465_p5, %p2764_p8  ;;  %p2474_p11 = por %p2473_p4, %p2472_p10 }
  0x84   : > { %p2468_p9 = pneg %p2467_p7 }
  0x86   : > { %p2475_p12 = pnand %p2474_p11, %p2468_p9 }
  0x88   : > { %2478 = shalt.err (!%p2475_p12)
}
  0x89   : > { %s2656_s16 = smov 128   ;;  %s2657_s26 = smov 8  }
  0x8a   : > { %2056 = dma.hbm_to_vmem [thread:$0]  (!%p2748_p6), %s3102_s4, 4096, %s280_s13, [#allocation9], %s2656_s16, %s2656_s16, %s2657_s26  }
  0x8b   : > { %s2658_s10 = smov [#allocation13]   ;;  %s2659_s18 = smov [#allocation14]  }
  0x8c   : > { %s304_s15 = sshll.u32 %s2658_s10, 4  ;;  %s315_s20 = sshll.u32 %s2659_s18, 4  ;;  %s305_s15 = int_to_ptr.vmem [resolvable:$true] %s304_s15  ;;  %s316_s20 = int_to_ptr.vmem [resolvable:$true] %s315_s20 }
  0x8d   : > { %s2479_s23 = scalar_lea.hbm %s3104_s6, 32 }
  0x8e   : > { %p2480_p1 = scmp.ne.s32.totalorder %s3104_s6, %s2479_s23  ;;  %p2486_p0 = scmp.lt.u32.totalorder %s2479_s23, %s3104_s6 }
  0x90   : > { %p2482_p3 = pnand %p2480_p1, %p2764_p8 }
  0x92   : > { %p2483_p13 = pneg %p2482_p3 }
  0x94   : > { %p2488_p2 = pnand %p2486_p0, %p2483_p13 }
  0x96   : > { %2491 = shalt.err (!%p2488_p2)
}
  0x97   : > { %s2492_s13 = scalar_lea.vmem %s305_s15, 32  ;;  %p2500_p10 = scmp.lt.s32.totalorder %s305_s15, %s305_s15 }
  0x98   : > { %p2493_p5 = scmp.ne.s32.totalorder %s305_s15, %s2492_s13  ;;  %p2501_p4 = scmp.lt.s32.totalorder %s2492_s13, %s2492_s13 }
  0x9a   : > { %p2495_p7 = pnand %p2493_p5, %p2764_p8  ;;  %p2502_p11 = por %p2501_p4, %p2500_p10 }
  0x9c   : > { %p2496_p9 = pneg %p2495_p7 }
  0x9e   : > { %p2503_p12 = pnand %p2502_p11, %p2496_p9 }
  0xa0   : > { %2506 = shalt.err (!%p2503_p12)
}
  0xa1   : > { %2062 = dma.hbm_to_vmem [thread:$0]  (!%p2748_p6), %s3104_s6, 32, %s305_s15, [#allocation12]  }
  0xa2   : > { %s2507_s14 = scalar_lea.hbm %s3105_s7, 32 }
  0xa3   : > { %p2508_p1 = scmp.ne.s32.totalorder %s3105_s7, %s2507_s14  ;;  %p2514_p0 = scmp.lt.u32.totalorder %s2507_s14, %s3105_s7 }
  0xa5   : > { %p2510_p3 = pnand %p2508_p1, %p2764_p8 }
  0xa7   : > { %p2511_p13 = pneg %p2510_p3 }
  0xa9   : > { %p2516_p2 = pnand %p2514_p0, %p2511_p13 }
  0xab   : > { %2519 = shalt.err (!%p2516_p2)
}
  0xac   : > { %s2520_s22 = scalar_lea.vmem %s316_s20, 32  ;;  %p2528_p10 = scmp.lt.s32.totalorder %s316_s20, %s316_s20 }
  0xad   : > { %p2521_p5 = scmp.ne.s32.totalorder %s316_s20, %s2520_s22  ;;  %p2529_p4 = scmp.lt.s32.totalorder %s2520_s22, %s2520_s22 }
  0xaf   : > { %p2523_p7 = pnand %p2521_p5, %p2764_p8  ;;  %p2530_p11 = por %p2529_p4, %p2528_p10 }
  0xb1   : > { %p2524_p9 = pneg %p2523_p7 }
  0xb3   : > { %p2531_p12 = pnand %p2530_p11, %p2524_p9 }
  0xb5   : > { %2534 = shalt.err (!%p2531_p12)
}
  0xb6   : > { %2065 = dma.hbm_to_vmem [thread:$0]  (!%p2748_p6), %s3105_s7, 32, %s316_s20, [#allocation15]  }
  0xb7   : > { %s1816_s25 = sadd.s32 4294967294, %s2647_s30   ;;  %s2906_s17 = sadd.s32 1, %s2647_s30  }
  0xb8   : > { %s35_s24 = sadd.s32 1, %s2643_s29  ;;  %s32_s19 = ssub.s32 %s2647_s30, %s2906_s17 }
  0xb9   : > { %p42_p8 = scmp.ne.s32.totalorder %s2643_s29, %s2639_s28  ;;  %p33_p1 = scmp.eq.s32.totalorder %s32_s19, 0 }
  0xba   : > { %p43_p3 = scmp.eq.s32.totalorder %s2647_s30, 0  ;;  %p48_p13 = scmp.ne.s32.totalorder %s2639_s28, %s2635_s27 }
  0xbb   : > { %p219_p0 = scmp.eq.s32.totalorder %s2730_s11, 1  ;;  %p3117_p5 = scmp.eq.s32.totalorder %s2730_s11, 0 }
  0xbc   : > { %s2918_s13 = scalar_select %p33_p1, %s2643_s29, %s35_s24  }
  0xbd   : > { %p44_p2 = por %p43_p3, %p42_p8  ;;  %p2922_p7 = por %p3117_p5, %p48_p13 }
  0xbe   : > { %p2926_p6 = por %p219_p0, %p42_p8  ;;  %p225_p9 = scmp.eq.s32.totalorder %s1816_s25, 1 }
  0xbf   : > { %p2081_p10 = scmp.lt.s32.totalorder %s2647_s30, 2  ;;  %s326_s26 = sand.u32 1, %s2643_s29  }
  0xc0   : > { %s3119_s20 = scalar_select %p2926_p6, 1, 0 }
  0xc1   : > { %p2932_p4 = por %p225_p9, %p48_p13  ;;  %s1826_s2 = sshll.u32 %s326_s26, 3 }
  0xc2   : > { %s1977_s14 = sshll.u32 %s2647_s30, 7  ;;  %s330_s21 = scalar_lea.vmem [#allocation2], %s1826_s2 }
  0xc3   : > { %s3120_s1 = scalar_select %p2932_p4, 1, 0 }
  0xc4   : > { %s2940_s18 = scalar_lea.hbm %s3098_s0, %s1977_s14  ;;  %s338_s22 = sshll.u32 %s330_s21, 4  ;;  %s2946_s22 = int_to_ptr.vmem [resolvable:$true] %s338_s22 }
  0xc5   : > { %p2942_p11 = pnand %p2081_p10, %p44_p2  ;;  %s327_s23 = scalar_lea.sflag [#allocation3], %s326_s26 }
  0xc6   : > { %s2535_s25 = scalar_lea.hbm %s2940_s18, 128  ;;  %s2540_s2 = scalar_lea.hbm %s3098_s0, 256 }
  0xc7   : > { %p2536_p12 = scmp.ne.s32.totalorder %s2940_s18, %s2535_s25  ;;  %p2537_p8 = pneg %p2942_p11 }
  0xc8   : > { %p2541_p13 = scmp.lt.u32.totalorder %s2940_s18, %s3098_s0  ;;  %p2542_p0 = scmp.lt.u32.totalorder %s2540_s2, %s2535_s25 }
  0xc9   : > { %p2538_p1 = pnand %p2537_p8, %p2536_p12  ;;  %p2544_p5 = scmp.lt.u32.totalorder %s2535_s25, %s2940_s18 }
  0xca   : > { %p2543_p2 = por %p2542_p0, %p2541_p13 }
  0xcb   : > { %p2539_p3 = pneg %p2538_p1 }
  0xcc   : > { %p2545_p9 = por %p2544_p5, %p2543_p2 }
  0xce   : > { %p2546_p10 = pnand %p2545_p9, %p2539_p3 }
  0xd0   : > { %2549 = shalt.err (!%p2546_p10)
}
  0xd1   : > { %s2550_s26 = scalar_lea.vmem %s2946_s22, 128  ;;  %s2660_s10 = smov [#allocation2]  }
  0xd2   : > { %p2551_p12 = scmp.ne.s32.totalorder %s2946_s22, %s2550_s26  ;;  %s2555_s21 = sshll.u32 %s2660_s10, 4  ;;  %s2556_s21 = int_to_ptr.vmem [resolvable:$false] %s2555_s21 }
  0xd3   : > { %s2557_s24 = scalar_lea.vmem %s2556_s21, 256  ;;  %p2558_p6 = scmp.lt.s32.totalorder %s2946_s22, %s2556_s21 }
  0xd4   : > { %p2553_p1 = pnand %p2551_p12, %p2537_p8  ;;  %p2559_p13 = scmp.lt.s32.totalorder %s2557_s24, %s2550_s26 }
  0xd6   : > { %p2554_p4 = pneg %p2553_p1  ;;  %p2560_p0 = por %p2559_p13, %p2558_p6 }
  0xd8   : > { %p2561_p2 = pnand %p2560_p0, %p2554_p4 }
  0xda   : > { %2564 = shalt.err (!%p2561_p2)
}
  0xdb   : > { %2069 = dma.hbm_to_vmem [thread:$0]  (!%p2942_p11), %s2940_s18, 128, %s2946_s22, %s327_s23  }
  0xdc   : > { %p3122_p3 = scmp.ne.s32.totalorder %s3112_s12, 0 }
  0xdd   : > { %s2976_s25 = sand.u32 (!%p3122_p3), 1, %s2639_s28  }
  0xde   : > { %347 = sbr.rel (%p3122_p3) target bundleno = 1832 (0x728), region = 52  ;;  %s1830_s19 = sshll.u32 (!%p3122_p3), %s2976_s25, 3 }
  0xdf   : > { %s350_s2 = scalar_lea.sflag (!%p3122_p3), [#allocation3], %s2976_s25  ;;  %s2982_s14 = scalar_lea.vmem (!%p3122_p3), [#allocation2], %s1830_s19 }
  0xe5   : > { %2610 = dma.done.wait (%p2922_p7), %s350_s2, 128  }
  0xe6   : > { %2612 = vsyncadd (%p2922_p7), %s350_s2, 4294967168  ;;  %p3123_p6 = scmp.eq.s32.totalorder %s2730_s11, 0 }
  0xe8   : > { %2614 = dma.done.wait (%p3123_p6), [#allocation6], 12416   ;;  %p3124_p4 = pmov %p3123_p6 }
  0xea   : > { %2616 = vsyncadd (%p3124_p4), [#allocation6], 4294954880  ;;  %p3125_p11 = pmov %p3124_p4 }
  0xeb   : > { %p3126_p8 = pmov %p3124_p4 }
  0xec   : > { %2618 = dma.done.wait (%p3125_p11), [#allocation9], 4192  }
  0xed   : > { %2620 = vsyncadd (%p3126_p8), [#allocation9], 4294963104  ;;  %p3127_p5 = pmov %p3124_p4 }
  0xee   : > { %p3128_p9 = pmov %p3124_p4 }
  0xef   : > { %2622 = dma.done.wait (%p3127_p5), [#allocation12], 64  }
  0xf0   : > { %2624 = vsyncadd (%p3128_p9), [#allocation12], 4294967232  ;;  %p3129_p7 = pmov %p3124_p4 }
  0xf1   : > { %p3130_p10 = pmov %p3124_p4 }
  0xf2   : > { %2626 = dma.done.wait (%p3129_p7), [#allocation15], 32  }
  0xf3   : > { %2628 = vsyncadd (%p3130_p10), [#allocation15], 4294967264  ;;  %v2135_v0 = vld [vmem:[#allocation7 + $0xc] ss:$24 sps:$4 sm:$0xff]   ;;  %v2137_v1 = vld [vmem:[#allocation7 + $0x8] ss:$24 sps:$4 sm:$0xff]  }
  0xf4   : > { %1072 = vmatprep.subr.bf16.mxu1 %v2135_v0  ;;  %v2138_v2 = vld [vmem:[#allocation7 + $0x3c] ss:$24 sps:$4 sm:$0xff]   ;;  %v2142_v4 = vld [vmem:[#allocation7 + $0x38] ss:$24 sps:$4 sm:$0xff]   ;;  %v2144_v6 = vld [vmem:[#allocation7 + $0x6c] ss:$24 sps:$4 sm:$0xff]  }
  0xf5   : > { %1073 = vmatpush1.bf16.msra.mxu1 %v2137_v1  ;;  %v2140_v3 = vld [vmem:[#allocation7 + $0x4] ss:$24 sps:$4 sm:$0xff]   ;;  %v2143_v5 = vld [vmem:[#allocation7] ss:$24 sps:$4 sm:$0xff]   ;;  %v2146_v7 = vld [vmem:[#allocation7 + $0x34] ss:$24 sps:$4 sm:$0xff]  }
  0xf6   : > { %1074 = vmatprep.subr.bf16.mxu1 %v2138_v2  ;;  %1031 = vmatprep.subr.bf16.mxu0 %v2140_v3  ;;  %v2149_v8 = vld [vmem:[#allocation7 + $0x30] ss:$24 sps:$4 sm:$0xff]   ;;  %v2150_v10 = vld [vmem:[#allocation7 + $0x9c] ss:$24 sps:$4 sm:$0xff]   ;;  %v2155_v12 = vld [vmem:[#allocation7 + $0x60] ss:$24 sps:$4 sm:$0xff]  }
  0xf7   : > { %1032 = vmatpush1.bf16.msra.mxu0 %v2143_v5  ;;  %v2148_v9 = vld [vmem:[#allocation7 + $0x68] ss:$24 sps:$4 sm:$0xff]   ;;  %v2152_v11 = vld [vmem:[#allocation7 + $0x64] ss:$24 sps:$4 sm:$0xff]   ;;  %v2154_v13 = vld [vmem:[#allocation7 + $0x98] ss:$24 sps:$4 sm:$0xff]  }
  0xf8   : > { %1033 = vmatprep.subr.bf16.mxu0 %v2146_v7  ;;  %v2158_v14 = vld [vmem:[#allocation7 + $0x94] ss:$24 sps:$4 sm:$0xff]   ;;  %v2160_v16 = vld [vmem:[#allocation7 + $0xc8] ss:$24 sps:$4 sm:$0xff]   ;;  %v2164_v18 = vld [vmem:[#allocation7 + $0xc4] ss:$24 sps:$4 sm:$0xff]  }
  0xf9   : > { %1075 = vmatpush1.bf16.msra.mxu1 %v2142_v4  ;;  %v2156_v15 = vld [vmem:[#allocation7 + $0xcc] ss:$24 sps:$4 sm:$0xff]   ;;  %v2161_v17 = vld [vmem:[#allocation7 + $0x90] ss:$24 sps:$4 sm:$0xff]   ;;  %v2162_v19 = vld [vmem:[#allocation7 + $0xfc] ss:$24 sps:$4 sm:$0xff]  }
  0xfa   : > { %1076 = vmatprep.subr.bf16.mxu1 %v2144_v6  ;;  %v2167_v20 = vld [vmem:[#allocation7 + $0xc0] ss:$24 sps:$4 sm:$0xff]   ;;  %v2170_v22 = vld [vmem:[#allocation7 + $0xf4] ss:$24 sps:$4 sm:$0xff]   ;;  %v2173_v25 = vld [vmem:[#allocation7 + $0xf0] ss:$24 sps:$4 sm:$0xff]  }
  0xfb   : > { %1034 = vmatpush1.bf16.msra.mxu0 %v2149_v8  ;;  %v2166_v21 = vld [vmem:[#allocation7 + $0xf8] ss:$24 sps:$4 sm:$0xff]   ;;  %v2168_v23 = vld [vmem:[#allocation7 + $0x12c] ss:$24 sps:$4 sm:$0xff]   ;;  %v2172_v24 = vld [vmem:[#allocation7 + $0x128] ss:$24 sps:$4 sm:$0xff]  }
  0xfc   : > { %1035 = vmatprep.subr.bf16.mxu0 %v2152_v11  ;;  %v2176_v26 = vld [vmem:[#allocation7 + $0x124] ss:$24 sps:$4 sm:$0xff]   ;;  %v2179_v28 = vld [vmem:[#allocation7 + $0x120] ss:$24 sps:$4 sm:$0xff]   ;;  %v2182_v30 = vld [vmem:[#allocation7 + $0x154] ss:$24 sps:$4 sm:$0xff]  }
  0xfd   : > { %1077 = vmatpush1.bf16.msra.mxu1 %v2148_v9  ;;  %v2174_v27 = vld [vmem:[#allocation7 + $0x15c] ss:$24 sps:$4 sm:$0xff]   ;;  %v2178_v29 = vld [vmem:[#allocation7 + $0x158] ss:$24 sps:$4 sm:$0xff]   ;;  %v2180_v31 = vld [vmem:[#allocation7 + $0x18c] ss:$24 sps:$4 sm:$0xff]  }
  0xfe   : > { %1078 = vmatprep.subr.bf16.mxu1 %v2150_v10  ;;  %v2184_v32 = vld [vmem:[#allocation7 + $0x188] ss:$24 sps:$4 sm:$0xff]   ;;  %v2188_v34 = vld [vmem:[#allocation7 + $0x184] ss:$24 sps:$4 sm:$0xff]   ;;  %v2190_v37 = vld [vmem:[#allocation7 + $0x1b8] ss:$24 sps:$4 sm:$0xff]  }
  0xff   : > { %1036 = vmatpush1.bf16.msra.mxu0 %v2155_v12  ;;  %v2185_v33 = vld [vmem:[#allocation7 + $0x150] ss:$24 sps:$4 sm:$0xff]   ;;  %v2186_v35 = vld [vmem:[#allocation7 + $0x1bc] ss:$24 sps:$4 sm:$0xff]   ;;  %v2191_v36 = vld [vmem:[#allocation7 + $0x180] ss:$24 sps:$4 sm:$0xff]  }
 0x100   : > { %1037 = vmatprep.subr.bf16.mxu0 %v2158_v14  ;;  %v2194_v38 = vld [vmem:[#allocation7 + $0x1b4] ss:$24 sps:$4 sm:$0xff]   ;;  %v2196_v40 = vld [vmem:[#allocation7 + $0x1e8] ss:$24 sps:$4 sm:$0xff]   ;;  %v2200_v42 = vld [vmem:[#allocation7 + $0x1e4] ss:$24 sps:$4 sm:$0xff]  }
 0x101   : > { %1079 = vmatpush1.bf16.msra.mxu1 %v2154_v13  ;;  %v2192_v39 = vld [vmem:[#allocation7 + $0x1ec] ss:$24 sps:$4 sm:$0xff]   ;;  %v2197_v41 = vld [vmem:[#allocation7 + $0x1b0] ss:$24 sps:$4 sm:$0xff]   ;;  %v2198_v43 = vld [vmem:[#allocation7 + $0x21c] ss:$24 sps:$4 sm:$0xff]  }
 0x102   : > { %1080 = vmatprep.subr.bf16.mxu1 %v2156_v15  ;;  %v3005_v44 = vld [vmem:[%s2982_s14] sm:$0xff]  ;;  %v2203_v46 = vld [vmem:[#allocation7 + $0x1e0] ss:$24 sps:$4 sm:$0xff]   ;;  %v2212_v52 = vld [vmem:[#allocation7 + $0x244] ss:$24 sps:$4 sm:$0xff]   ;;  %vm2662_vm0 = vmmov 0  }
 0x103   : > { %1038 = vmatpush1.bf16.msra.mxu0 %v2161_v17  ;;  %v2202_v45 = vld [vmem:[#allocation7 + $0x218] ss:$24 sps:$4 sm:$0xff]   ;;  %v1840_v47 = vcombine.high %v3005_v44, %v3005_v44  ;;  %v2206_v48 = vld [vmem:[#allocation7 + $0x214] ss:$24 sps:$4 sm:$0xff]   ;;  %v2208_v50 = vld [vmem:[#allocation7 + $0x248] ss:$24 sps:$4 sm:$0xff]   ;;  %v3011_v1 = vcombine.low %v3005_v44, %v3005_v44 }
 0x104   : > { %1039 = vmatprep.subr.bf16.mxu0 %v2164_v18  ;;  %v2204_v49 = vld [vmem:[#allocation7 + $0x24c] ss:$24 sps:$4 sm:$0xff]   ;;  %v2209_v51 = vld [vmem:[#allocation7 + $0x210] ss:$24 sps:$4 sm:$0xff]   ;;  %v2210_v53 = vld [vmem:[#allocation7 + $0x27c] ss:$24 sps:$4 sm:$0xff]  }
 0x105   : > { %1081 = vmatpush1.bf16.msra.mxu1 %v2160_v16  ;;  %1104 = vmatprep.mubr.bf16.mxu1 %v1840_v47  ;;  %v2214_v54 = vld [vmem:[#allocation7 + $0x278] ss:$24 sps:$4 sm:$0xff]   ;;  %v2218_v56 = vld [vmem:[#allocation7 + $0x274] ss:$24 sps:$4 sm:$0xff]   ;;  %v2220_v58 = vld [vmem:[#allocation7 + $0x2a8] ss:$24 sps:$4 sm:$0xff]  }
 0x106   : > { %1082 = vmatprep.subr.bf16.mxu1 %v2162_v19  ;;  %1063 = vmatprep.mubr.bf16.mxu0 %v1840_v47  ;;  %v2215_v55 = vld [vmem:[#allocation7 + $0x240] ss:$24 sps:$4 sm:$0xff]   ;;  %v2216_v57 = vld [vmem:[#allocation7 + $0x2ac] ss:$24 sps:$4 sm:$0xff]   ;;  %v2221_v59 = vld [vmem:[#allocation7 + $0x270] ss:$24 sps:$4 sm:$0xff]  }
 0x107   : > { %1040 = vmatpush1.bf16.msra.mxu0 %v2167_v20  ;;  %v2224_v60 = vld [vmem:[#allocation7 + $0x2a4] ss:$24 sps:$4 sm:$0xff]   ;;  %v2226_v62 = vld [vmem:[#allocation7 + $0x2d8] ss:$24 sps:$4 sm:$0xff]   ;;  %v2230_v0 = vld [vmem:[#allocation7 + $0x2d4] ss:$24 sps:$4 sm:$0xff]  }
 0x108   : > { %1041 = vmatprep.subr.bf16.mxu0 %v2170_v22  ;;  %v2222_v61 = vld [vmem:[#allocation7 + $0x2dc] ss:$24 sps:$4 sm:$0xff]   ;;  %v2227_v63 = vld [vmem:[#allocation7 + $0x2a0] ss:$24 sps:$4 sm:$0xff]   ;;  %v2232_v2 = vld [vmem:[#allocation7 + $0x2d0] ss:$24 sps:$4 sm:$0xff]  }
 0x109   : > { %1083 = vmatpush1.bf16.msra.mxu1 %v2166_v21  ;;  %v2235_v3 = vld [vmem:[#allocation7 + $0x14] ss:$24 sps:$4 sm:$0xff]   ;;  %v2233_v4 = vld [vmem:[#allocation7 + $0x10] ss:$24 sps:$4 sm:$0xff]   ;;  %v2238_v5 = vld [vmem:[#allocation7 + $0x44] ss:$24 sps:$4 sm:$0xff]  }
 0x10a   : > { %1084 = vmatprep.subr.bf16.mxu1 %v2168_v23  ;;  %v2236_v6 = vld [vmem:[#allocation7 + $0x40] ss:$24 sps:$4 sm:$0xff]   ;;  %v2241_v7 = vld [vmem:[#allocation7 + $0x74] ss:$24 sps:$4 sm:$0xff]   ;;  %v2239_v8 = vld [vmem:[#allocation7 + $0x70] ss:$24 sps:$4 sm:$0xff]  }
 0x10b   : > { %1042 = vmatpush1.bf16.msra.mxu0 %v2173_v25  ;;  %v2244_v9 = vld [vmem:[#allocation7 + $0xa4] ss:$24 sps:$4 sm:$0xff]   ;;  %v2242_v10 = vld [vmem:[#allocation7 + $0xa0] ss:$24 sps:$4 sm:$0xff]   ;;  %v2247_v11 = vld [vmem:[#allocation7 + $0xd4] ss:$24 sps:$4 sm:$0xff]  }
 0x10c   : > { %1043 = vmatprep.subr.bf16.mxu0 %v2176_v26  ;;  %v2245_v12 = vld [vmem:[#allocation7 + $0xd0] ss:$24 sps:$4 sm:$0xff]   ;;  %v2250_v13 = vld [vmem:[#allocation7 + $0x104] ss:$24 sps:$4 sm:$0xff]   ;;  %v2248_v14 = vld [vmem:[#allocation7 + $0x100] ss:$24 sps:$4 sm:$0xff]  }
 0x10d   : > { %1085 = vmatpush1.bf16.msra.mxu1 %v2172_v24  ;;  %v2253_v15 = vld [vmem:[#allocation7 + $0x134] ss:$24 sps:$4 sm:$0xff]   ;;  %v2251_v16 = vld [vmem:[#allocation7 + $0x130] ss:$24 sps:$4 sm:$0xff]   ;;  %v2256_v17 = vld [vmem:[#allocation7 + $0x164] ss:$24 sps:$4 sm:$0xff]  }
 0x10e   : > { %1086 = vmatprep.subr.bf16.mxu1 %v2174_v27  ;;  %v2254_v18 = vld [vmem:[#allocation7 + $0x160] ss:$24 sps:$4 sm:$0xff]   ;;  %v2259_v19 = vld [vmem:[#allocation7 + $0x194] ss:$24 sps:$4 sm:$0xff]   ;;  %v2257_v20 = vld [vmem:[#allocation7 + $0x190] ss:$24 sps:$4 sm:$0xff]  }
 0x10f   : > { %1044 = vmatpush1.bf16.msra.mxu0 %v2179_v28  ;;  %v2262_v21 = vld [vmem:[#allocation7 + $0x1c4] ss:$24 sps:$4 sm:$0xff]   ;;  %v2260_v22 = vld [vmem:[#allocation7 + $0x1c0] ss:$24 sps:$4 sm:$0xff]   ;;  %v2265_v23 = vld [vmem:[#allocation7 + $0x1f4] ss:$24 sps:$4 sm:$0xff]  }
 0x110   : > { %1045 = vmatprep.subr.bf16.mxu0 %v2182_v30  ;;  %v2263_v24 = vld [vmem:[#allocation7 + $0x1f0] ss:$24 sps:$4 sm:$0xff]   ;;  %v2268_v25 = vld [vmem:[#allocation7 + $0x224] ss:$24 sps:$4 sm:$0xff]   ;;  %v2266_v26 = vld [vmem:[#allocation7 + $0x220] ss:$24 sps:$4 sm:$0xff]  }
 0x111   : > { %1087 = vmatpush1.bf16.msra.mxu1 %v2178_v29  ;;  %v2271_v27 = vld [vmem:[#allocation7 + $0x254] ss:$24 sps:$4 sm:$0xff]   ;;  %v2269_v28 = vld [vmem:[#allocation7 + $0x250] ss:$24 sps:$4 sm:$0xff]   ;;  %v2274_v29 = vld [vmem:[#allocation7 + $0x284] ss:$24 sps:$4 sm:$0xff]  }
 0x112   : > { %1088 = vmatprep.subr.bf16.mxu1 %v2180_v31  ;;  %v2272_v30 = vld [vmem:[#allocation7 + $0x280] ss:$24 sps:$4 sm:$0xff]   ;;  %v2277_v31 = vld [vmem:[#allocation7 + $0x2b4] ss:$24 sps:$4 sm:$0xff]   ;;  %vm1269_vm1 = vcmask 1043456   ;;  %vm1241_vm2 = vcmask 64512  }
 0x113   : > { %1046 = vmatpush1.bf16.msra.mxu0 %v2185_v33  ;;  %v2280_v33 = vld [vmem:[#allocation7 + $0x2e4] ss:$24 sps:$4 sm:$0xff]   ;;  %s1979_s12 = sshll.u32 %s2730_s11, 7  ;;  %s413_s16 = scalar_lea.vmem [#allocation16], %s1830_s19 }
 0x114   : > { %1047 = vmatprep.subr.bf16.mxu0 %v2188_v34  ;;  %v2278_v34 = vld [vmem:[#allocation7 + $0x2e0] ss:$24 sps:$4 sm:$0xff]   ;;  %s1679_s18 = sshll.u32 %s413_s16, 4  ;;  %s3054_s23 = scalar_lea.hbm %s3106_s8, %s1979_s12  ;;  %s3056_s18 = int_to_ptr.vmem [resolvable:$true] %s1679_s18 }
 0x115   : > { %1089 = vmatpush1.bf16.msra.mxu1 %v2184_v32  ;;  %v2275_v32 = vld [vmem:[#allocation7 + $0x2b0] ss:$24 sps:$4 sm:$0xff]   ;;  %s1665_s9 = scalar_lea.sflag [#allocation4], %s2976_s25  ;;  %s2565_s26 = scalar_lea.vmem %s3056_s18, 128 }
 0x116   : > { %1090 = vmatprep.subr.bf16.mxu1 %v2186_v35  ;;  %v2661_v35 = vmov 0.0   ;;  %p2566_p12 = scmp.ne.s32.totalorder %s3056_s18, %s2565_s26  ;;  %p3131_p1 = scmp.ne.s32.totalorder %s3119_s20, 0 }
 0x117   : > { %1048 = vmatpush1.bf16.msra.mxu0 %v2191_v36  ;;  %v514_v36 = vlaneseq  ;;  %s2663_s11 = smov [#allocation16]  }
 0x118   : > { %1049 = vmatprep.subr.bf16.mxu0 %v2194_v38  ;;  %p2567_p13 = pnand %p2566_p12, %p3131_p1  ;;  %s2569_s10 = sshll.u32 %s2663_s11, 4  ;;  %s2570_s10 = int_to_ptr.vmem [resolvable:$false] %s2569_s10 }
 0x119   : > { %1091 = vmatpush1.bf16.msra.mxu1 %v2190_v37  ;;  %v515_v37 = vshrl.u32 %v514_v36, 7  ;;  %s2571_s21 = scalar_lea.vmem %s2570_s10, 256  ;;  %p2572_p2 = scmp.lt.s32.totalorder %s3056_s18, %s2570_s10 }
 0x11a   : > { %1092 = vmatprep.subr.bf16.mxu1 %v2192_v39  ;;  %v512_v39 = vld [vmem:[#allocation8] sm:$0x3f]  ;;  %p2568_p0 = pneg %p2567_p13  ;;  %p2573_p3 = scmp.lt.s32.totalorder %s2571_s21, %s2565_s26 }
 0x11b   : > { %1050 = vmatpush1.bf16.msra.mxu0 %v2197_v41  ;;  %v524_v38 = vsub.s32 2, %v515_v37 }
 0x11c   : > { %1051 = vmatprep.subr.bf16.mxu0 %v2200_v42  ;;  %v528_v42 = vsub.s32 3, %v515_v37  ;;  %p2574_p6 = por %p2573_p3, %p2572_p2 }
 0x11d   : > { %1093 = vmatpush1.bf16.msra.mxu1 %v2196_v40  ;;  %v3022_v40 = vsub.s32 0, %v515_v37  ;;  %v525_v41 = vrot.slane %v512_v39, %v524_v38 }
 0x11e   : > { %1094 = vmatprep.subr.bf16.mxu1 %v2198_v43  ;;  %p2575_p4 = pnand %p2574_p6, %p2568_p0 }
 0x11f   : > { %1052 = vmatpush1.bf16.msra.mxu0 %v2203_v46 }
 0x120   : > { %1053 = vmatprep.subr.bf16.mxu0 %v2206_v48 }
 0x121   : > { %1095 = vmatpush1.bf16.msra.mxu1 %v2202_v45  ;;  %v517_v45 = vrot.slane %v512_v39, %v3022_v40 }
 0x122   : > { %1096 = vmatprep.subr.bf16.mxu1 %v2204_v49 }
 0x123   : > { %1054 = vmatpush1.bf16.msra.mxu0 %v2209_v51 }
 0x124   : > { %1055 = vmatprep.subr.bf16.mxu0 %v2212_v52 }
 0x125   : > { %1097 = vmatpush1.bf16.msra.mxu1 %v2208_v50  ;;  %v529_v50 = vrot.slane %v512_v39, %v528_v42 }
 0x126   : > { %1098 = vmatprep.subr.bf16.mxu1 %v2210_v53 }
 0x127   : > { %1056 = vmatpush1.bf16.msra.mxu0 %v2215_v55 }
 0x128   : > { %1057 = vmatprep.subr.bf16.mxu0 %v2218_v56  ;;  %v3025_v56 = vsub.s32 1, %v515_v37 }
 0x129   : > { %1099 = vmatpush1.bf16.msra.mxu1 %v2214_v54 }
 0x12a   : > { %1100 = vmatprep.subr.bf16.mxu1 %v2216_v57 }
 0x12b   : > { %1058 = vmatpush1.bf16.msra.mxu0 %v2221_v59 }
 0x12c   : > { %1059 = vmatprep.subr.bf16.mxu0 %v2224_v60  ;;  %v521_v60 = vrot.slane %v512_v39, %v3025_v56 }
 0x12d   : > { %1101 = vmatpush1.bf16.msra.mxu1 %v2220_v58 }
 0x12e   : > { %1102 = vmatprep.subr.bf16.mxu1 %v2222_v61 }
 0x12f   : > { %1060 = vmatpush1.bf16.msra.mxu0 %v2227_v63 }
 0x130   : > { %1061 = vmatprep.subr.bf16.mxu0 %v2230_v0  ;;  %v532_v0 = vsub.s32 4, %v515_v37 }
 0x131   : > { %1103 = vmatpush1.bf16.msra.mxu1 %v2226_v62 }
 0x132   : > { %2000 = vmatprep.subr.bf16.mxu1 %v2661_v35 }
 0x133   : > { %1062 = vmatpush1.bf16.msra.mxu0 %v2232_v2  ;;  %v533_v2 = vrot.slane %v512_v39, %v532_v0  ;;  %v2307_v0 = vld [vmem:[#allocation10 + $0x84] ss:$8 sps:$4 sm:$0xff]  }
 0x134   : > { %1105 = vmatmul.mubr.bf16.vlgmr.msra.gmra.mrb[0].mxu1 %v3011_v1  ;;  %1113 = vmatprep.subr.bf16.mxu0 %v2235_v3 }
 0x135   : > { %2002 = vmatprep.mubr.msk.bf16.mxu1 %vm2662_vm0, %v2661_v35 }
 0x136   : > { %1064 = vmatmul.mubr.bf16.vlgmr.msra.gmra.mrb[0].mxu0 %v3011_v1 }
 0x137   : > { %1114 = vmatpush1.bf16.msra.mxu0 %v2233_v4  ;;  %1145 = vmatprep.mubr.bf16.mxu0 %v1840_v47 }
 0x138   : > { %1115 = vmatprep.subr.bf16.mxu0 %v2238_v5 }
 0x13b   : > { %1116 = vmatpush1.bf16.msra.mxu0 %v2236_v6 }
 0x13c   : > { %1117 = vmatprep.subr.bf16.mxu0 %v2241_v7 }
 0x13f   : > { %1118 = vmatpush1.bf16.msra.mxu0 %v2239_v8 }
 0x140   : > { %1119 = vmatprep.subr.bf16.mxu0 %v2244_v9 }
 0x143   : > { %1120 = vmatpush1.bf16.msra.mxu0 %v2242_v10 }
 0x144   : > { %1121 = vmatprep.subr.bf16.mxu0 %v2247_v11 }
 0x147   : > { %1122 = vmatpush1.bf16.msra.mxu0 %v2245_v12 }
 0x148   : > { %1123 = vmatprep.subr.bf16.mxu0 %v2250_v13 }
 0x14b   : > { %1124 = vmatpush1.bf16.msra.mxu0 %v2248_v14  ;;  %v1160_v14 = vld [vmem:[#allocation5] sm:$0xff] }
 0x14c   : > { %1125 = vmatprep.subr.bf16.mxu0 %v2253_v15 }
 0x14f   : > { %1126 = vmatpush1.bf16.msra.mxu0 %v2251_v16 }
 0x150   : > { %1127 = vmatprep.subr.bf16.mxu0 %v2256_v17 }
 0x153   : > { %1128 = vmatpush1.bf16.msra.mxu0 %v2254_v18 }
 0x154   : > { %1129 = vmatprep.subr.bf16.mxu0 %v2259_v19 }
 0x157   : > { %1130 = vmatpush1.bf16.msra.mxu0 %v2257_v20 }
 0x158   : > { %1131 = vmatprep.subr.bf16.mxu0 %v2262_v21 }
 0x15b   : > { %1132 = vmatpush1.bf16.msra.mxu0 %v2260_v22 }
 0x15c   : > { %1133 = vmatprep.subr.bf16.mxu0 %v2265_v23 }
 0x15f   : > { %1134 = vmatpush1.bf16.msra.mxu0 %v2263_v24 }
 0x160   : > { %1135 = vmatprep.subr.bf16.mxu0 %v2268_v25 }
 0x163   : > { %1136 = vmatpush1.bf16.msra.mxu0 %v2266_v26 }
 0x164   : > { %1137 = vmatprep.subr.bf16.mxu0 %v2271_v27 }
 0x167   : > { %1138 = vmatpush1.bf16.msra.mxu0 %v2269_v28 }
 0x168   : > { %1139 = vmatprep.subr.bf16.mxu0 %v2274_v29 }
 0x16b   : > { %1140 = vmatpush1.bf16.msra.mxu0 %v2272_v30 }
 0x16c   : > { %1141 = vmatprep.subr.bf16.mxu0 %v2277_v31 }
 0x16f   : > { %1142 = vmatpush1.bf16.msra.mxu0 %v2275_v32 }
 0x170   : > { %1143 = vmatprep.subr.bf16.mxu0 %v2280_v33 }
 0x173   : > { %1144 = vmatpush1.bf16.msra.mxu0 %v2278_v34 }
 0x174   : > { %1988 = vmatprep.subr.bf16.mxu0 %v2661_v35 }
 0x176   : > { %1146 = vmatmul.mubr.bf16.vlgmr.msra.gmra.mrb[4].mxu0 %v3011_v1  ;;  %v536_v1 = vsub.s32 5, %v515_v37 }
 0x177   : > { %1990 = vmatprep.mubr.msk.bf16.mxu0 %vm2662_vm0, %v2661_v35 }
 0x178   : > { %v537_v3 = vrot.slane %v512_v39, %v536_v1  ;;  %v2305_v1 = vld [vmem:[#allocation10 + $0x80] ss:$8 sps:$4 sm:$0xff]  }
 0x207   : > { %v1106_v43 = vpop.f32.mrb[0].mxu1 }
 0x208   : > { %v1107_v46 = vadd.f32 %v1106_v43, %v525_v41  ;;  %v1108_v47 = vpop.f32.mrb[1].mxu1 }
 0x209   : > { %v1110_v48 = vpop.f32.mrb[2].mxu1  ;;  %v1065_v52 = vpop.f32.mrb[0].mxu0  ;;  %v1109_v58 = vadd.f32 %v1108_v47, %v529_v50  ;;  %v2286_v50 = vld [vmem:[#allocation10 + $0x14] ss:$8 sps:$4 sm:$0xff]  }
 0x20a   : > { %v1156_v49 = vpack.c.bf16 %v1107_v46, %v1107_v46  ;;  %v1111_v51 = vpop.f32.mrb[3].mxu1  ;;  %v1066_v53 = vadd.f32 %v1065_v52, %v517_v45  ;;  %v1067_v54 = vpop.f32.mrb[1].mxu0  ;;  %v2283_v45 = vld [vmem:[#allocation10 + $0x4] ss:$8 sps:$4 sm:$0xff]   ;;  %v2281_v48 = vld [vmem:[#allocation10] ss:$8 sps:$4 sm:$0xff]  }
 0x20b   : > { %v1069_v55 = vpop.f32.mrb[2].mxu0  ;;  %v1157_v61 = vpack.c.bf16 %v1109_v58, %v1109_v58  ;;  %v1068_v62 = vadd.f32 %v1067_v54, %v521_v60  ;;  %v2284_v51 = vld [vmem:[#allocation10 + $0x10] ss:$8 sps:$4 sm:$0xff]   ;;  %v2289_v52 = vld [vmem:[#allocation10 + $0x24] ss:$8 sps:$4 sm:$0xff]  }
 0x20c   : > { %1989 = vmatpush3.bf16.xpose.msra.mxu0 %v1156_v49  ;;  %v1070_v57 = vpop.f32.mrb[3].mxu0  ;;  %v1154_v59 = vpack.c.bf16 %v1066_v53, %v1066_v53  ;;  %v2287_v53 = vld [vmem:[#allocation10 + $0x20] ss:$8 sps:$4 sm:$0xff]   ;;  %v2292_v54 = vld [vmem:[#allocation10 + $0x34] ss:$8 sps:$4 sm:$0xff]  }
 0x20d   : > { %1994 = vmatprep.subr.bf16.mxu0 %v2661_v35  ;;  %v1155_v63 = vpack.c.bf16 %v1068_v62, %v1068_v62  ;;  %v2290_v55 = vld [vmem:[#allocation10 + $0x30] ss:$8 sps:$4 sm:$0xff]   ;;  %v2293_v57 = vld [vmem:[#allocation10 + $0x40] ss:$8 sps:$4 sm:$0xff]   ;;  %v2298_v58 = vld [vmem:[#allocation10 + $0x54] ss:$8 sps:$4 sm:$0xff]  }
 0x20e   : > { %v2301_v60 = vld [vmem:[#allocation10 + $0x64] ss:$8 sps:$4 sm:$0xff]   ;;  %v2304_v62 = vld [vmem:[#allocation10 + $0x74] ss:$8 sps:$4 sm:$0xff]  }
 0x213   : > { %1991 = vmatmul.mubr.bf16.vlgmr.msra.gmra.mrb[8].mxu0 %v1154_v59  ;;  %v2296_v59 = vld [vmem:[#allocation10 + $0x50] ss:$8 sps:$4 sm:$0xff]  }
 0x214   : > { %1995 = vmatpush3.bf16.xpose.msra.mxu0 %v1157_v61  ;;  %1996 = vmatprep.mubr.msk.bf16.mxu0 %vm2662_vm0, %v2661_v35  ;;  %v2299_v61 = vld [vmem:[#allocation10 + $0x60] ss:$8 sps:$4 sm:$0xff]  }
 0x21b   : > { %1997 = vmatmul.mubr.bf16.vlgmr.msra.gmra.mrb[12].mxu0 %v1155_v63  ;;  %v2302_v63 = vld [vmem:[#allocation10 + $0x70] ss:$8 sps:$4 sm:$0xff]  }
 0x249   : > { %v1147_v4 = vpop.f32.mrb[4].mxu0 }
 0x24a   : > { %v1148_v5 = vadd.f32 %v1147_v4, %v533_v2  ;;  %v1149_v6 = vpop.f32.mrb[5].mxu0  ;;  %v2310_v2 = vld [vmem:[#allocation10 + $0x94] ss:$8 sps:$4 sm:$0xff]   ;;  %v2313_v4 = vld [vmem:[#allocation10 + $0xa4] ss:$8 sps:$4 sm:$0xff]  }
 0x24b   : > { %v1150_v7 = vadd.f32 %v1149_v6, %v537_v3  ;;  %v1151_v8 = vpop.f32.mrb[6].mxu0  ;;  %v2308_v3 = vld [vmem:[#allocation10 + $0x90] ss:$8 sps:$4 sm:$0xff]   ;;  %v2316_v6 = vld [vmem:[#allocation10 + $0xb4] ss:$8 sps:$4 sm:$0xff]  }
 0x24c   : > { %v1158_v9 = vpack.c.bf16 %v1148_v5, %v1148_v5  ;;  %v1152_v10 = vpop.f32.mrb[7].mxu0  ;;  %v2311_v5 = vld [vmem:[#allocation10 + $0xa0] ss:$8 sps:$4 sm:$0xff]   ;;  %v2319_v8 = vld [vmem:[#allocation10 + $0xc4] ss:$8 sps:$4 sm:$0xff]  }
 0x24d   : > { %v1159_v11 = vpack.c.bf16 %v1150_v7, %v1150_v7  ;;  %v2314_v7 = vld [vmem:[#allocation10 + $0xb0] ss:$8 sps:$4 sm:$0xff]   ;;  %v2322_v10 = vld [vmem:[#allocation10 + $0xd4] ss:$8 sps:$4 sm:$0xff]  }
 0x24e   : > { %v1271_v12 = vsel %vm1269_vm1, %v1158_v9, 0  ;;  %v2317_v9 = vld [vmem:[#allocation10 + $0xc0] ss:$8 sps:$4 sm:$0xff]  }
 0x24f   : > { %v1317_v13 = vsel %vm1269_vm1, %v1159_v11, 0  ;;  %2001 = vmatpush3.bf16.msra.mxu1 %v1271_v12  ;;  %v2320_v11 = vld [vmem:[#allocation10 + $0xd0] ss:$8 sps:$4 sm:$0xff]   ;;  %v2323_v12 = vld [vmem:[#allocation10 + $0xe0] ss:$8 sps:$4 sm:$0xff]  }
 0x250   : > { %2006 = vmatprep.subr.bf16.mxu1 %v2661_v35 }
 0x2e6   : > { %v1195_v15 = vpop.f32.mrb[8].mxu0 }
 0x2e7   : > { %v1196_v16 = vadd.f32 %v1195_v15, %v1160_v14  ;;  %v1992_v17 = vpop.f32.mrb[9].mxu0  ;;  %v2326_v15 = vld [vmem:[#allocation10 + $0xf0] ss:$8 sps:$4 sm:$0xff]  }
 0x2e8   : > { %v1198_v18 = vpop.f32.mrb[10].mxu0 }
 0x2e9   : > { %v1993_v19 = vpop.f32.mrb[11].mxu0  ;;  %v1242_v20 = vsel %vm1241_vm2, %v1196_v16, -inf }
 0x2ea   : > { %1243 = vmax.xlane.f32.xlu0 %v1242_v20 }
 0x2ee   : > { %v1235_v21 = vpop.f32.mrb[12].mxu0 }
 0x2ef   : > { %v1236_v22 = vadd.f32 %v1235_v21, %v1160_v14  ;;  %v1998_v23 = vpop.f32.mrb[13].mxu0  ;;  %v2328_v14 = vld [vmem:[#allocation10 + $0xf4] ss:$8 sps:$4 sm:$0xff]  }
 0x2f0   : > { %v1238_v24 = vpop.f32.mrb[14].mxu0 }
 0x2f1   : > { %v1999_v25 = vpop.f32.mrb[15].mxu0  ;;  %v1245_v26 = vsel %vm1241_vm2, %v1236_v22, -inf }
 0x2f2   : > { %1246 = vmax.xlane.f32.xlu0 %v1245_v26  ;;  %v1393_v26 = vld [vmem:[#allocation11] sm:$0x3] }
 0x377   : > { %v1244_v27 = vpop.xlane.xlu0 %1243 }
 0x378   : > { %v1248_v28 = vsub.f32 %v1196_v16, %v1244_v27  ;;  %v1398_v27 = vrot.slane %v1393_v26, %v3022_v40 }
 0x37a   : > { %v1250_v29 = vmul.f32 1.442695, %v1248_v28  ;;  %v1402_v28 = vrot.slane %v1393_v26, %v3025_v56 }
 0x37c   : > { %2329 = vpow2.f32 %v1250_v29  ;;  %v1606_v29 = vunpack.c.l.bf16 %v3005_v44 }
 0x37f   : > { %v1247_v30 = vpop.xlane.xlu0 %1246 }
 0x380   : > { %v1249_v31 = vsub.f32 %v1236_v22, %v1247_v30 }
 0x382   : > { %v1252_v32 = vmul.f32 1.442695, %v1249_v31  ;;  %v1607_v31 = vunpack.c.h.bf16 %v3005_v44 }
 0x384   : > { %2331 = vpow2.f32 %v1252_v32 }
 0x386   : > { %v2330_v33 = vpop.eup %2329 }
 0x387   : > { %v1254_v34 = vsel %vm1241_vm2, %v2330_v33, 0.0 }
 0x388   : > { %1255 = vadd.xlane.f32.xlu1 %v1254_v34 }
 0x38e   : > { %v2332_v36 = vpop.eup %2331 }
 0x38f   : > { %v1257_v37 = vsel %vm1241_vm2, %v2332_v36, 0.0 }
 0x390   : > { %1258 = vadd.xlane.f32.xlu1 %v1257_v37 }
 0x415   : > { %v1256_v38 = vpop.xlane.xlu1 %1255 }
 0x416   : > { %2333 = vrcp.f32 %v1256_v38 }
 0x41d   : > { %v1259_v39 = vpop.xlane.xlu1 %1258 }
 0x41e   : > { %2335 = vrcp.f32 %v1259_v39 }
 0x420   : > { %v2334_v41 = vpop.eup %2333 }
 0x421   : > { %v1262_v42 = vmul.f32 %v2334_v41, %v2330_v33 }
 0x423   : > { %v1264_v43 = vpack.c.bf16 %v1262_v42, %v1262_v42 }
 0x425   : > { %2003 = vmatmul.mubr.msk.bf16.vlgmr.msra.gmra.mrb[4].mxu1 %vm1241_vm2, %v1264_v43 }
 0x426   : > { %2007 = vmatpush3.bf16.msra.mxu1 %v1317_v13  ;;  %2008 = vmatprep.mubr.msk.bf16.mxu1 %vm2662_vm0, %v2661_v35  ;;  %v2295_v35 = vld [vmem:[#allocation10 + $0x44] ss:$8 sps:$4 sm:$0xff]  }
 0x427   : > { %1565 = vmatprep.subr.bf16.mxu1 %v2283_v45  ;;  %v2325_v13 = vld [vmem:[#allocation10 + $0xe4] ss:$8 sps:$4 sm:$0xff]  }
 0x428   : > { %v2336_v46 = vpop.eup %2335 }
 0x429   : > { %v1263_v47 = vmul.f32 %v2336_v46, %v2332_v36 }
 0x42b   : > { %v1265_v49 = vpack.c.bf16 %v1263_v47, %v1263_v47 }
 0x42d   : > { %2009 = vmatmul.mubr.msk.bf16.vlgmr.msra.gmra.mrb[8].mxu1 %vm1241_vm2, %v1265_v49 }
 0x42e   : > { %1566 = vmatpush1.bf16.msra.mxu1 %v2281_v48 }
 0x42f   : > { %1567 = vmatprep.subr.bf16.mxu1 %v2286_v50 }
 0x432   : > { %1568 = vmatpush1.bf16.msra.mxu1 %v2284_v51 }
 0x433   : > { %1569 = vmatprep.subr.bf16.mxu1 %v2289_v52  ;;  %v1610_v52 = vld [vmem:[#allocation13] sm:$0x3] }
 0x436   : > { %1570 = vmatpush1.bf16.msra.mxu1 %v2287_v53  ;;  %v1611_v53 = vld [vmem:[#allocation14] sm:$0x3] }
 0x437   : > { %1571 = vmatprep.subr.bf16.mxu1 %v2292_v54  ;;  %v1633_v54 = vrot.slane %v1610_v52, %v3022_v40 }
 0x43a   : > { %1572 = vmatpush1.bf16.msra.mxu1 %v2290_v55  ;;  %v1637_v55 = vrot.slane %v1610_v52, %v3025_v56 }
 0x43b   : > { %1573 = vmatprep.subr.bf16.mxu1 %v2295_v35 }
 0x43e   : > { %1574 = vmatpush1.bf16.msra.mxu1 %v2293_v57 }
 0x43f   : > { %1575 = vmatprep.subr.bf16.mxu1 %v2298_v58 }
 0x442   : > { %1576 = vmatpush1.bf16.msra.mxu1 %v2296_v59  ;;  %v1646_v59 = vrot.slane %v1611_v53, %v3022_v40 }
 0x443   : > { %1577 = vmatprep.subr.bf16.mxu1 %v2301_v60  ;;  %v1650_v60 = vrot.slane %v1611_v53, %v3025_v56 }
 0x446   : > { %1578 = vmatpush1.bf16.msra.mxu1 %v2299_v61 }
 0x447   : > { %1579 = vmatprep.subr.bf16.mxu1 %v2304_v62 }
 0x44a   : > { %1580 = vmatpush1.bf16.msra.mxu1 %v2302_v63 }
 0x44b   : > { %1581 = vmatprep.subr.bf16.mxu1 %v2307_v0 }
 0x44e   : > { %1582 = vmatpush1.bf16.msra.mxu1 %v2305_v1 }
 0x44f   : > { %1583 = vmatprep.subr.bf16.mxu1 %v2310_v2 }
 0x452   : > { %1584 = vmatpush1.bf16.msra.mxu1 %v2308_v3 }
 0x453   : > { %1585 = vmatprep.subr.bf16.mxu1 %v2313_v4 }
 0x456   : > { %1586 = vmatpush1.bf16.msra.mxu1 %v2311_v5 }
 0x457   : > { %1587 = vmatprep.subr.bf16.mxu1 %v2316_v6 }
 0x45a   : > { %1588 = vmatpush1.bf16.msra.mxu1 %v2314_v7 }
 0x45b   : > { %1589 = vmatprep.subr.bf16.mxu1 %v2319_v8 }
 0x45e   : > { %1590 = vmatpush1.bf16.msra.mxu1 %v2317_v9 }
 0x45f   : > { %1591 = vmatprep.subr.bf16.mxu1 %v2322_v10 }
 0x462   : > { %1592 = vmatpush1.bf16.msra.mxu1 %v2320_v11 }
 0x463   : > { %1593 = vmatprep.subr.bf16.mxu1 %v2325_v13 }
 0x466   : > { %1594 = vmatpush1.bf16.msra.mxu1 %v2323_v12 }
 0x467   : > { %1595 = vmatprep.subr.bf16.mxu1 %v2328_v14 }
 0x46a   : > { %1596 = vmatpush1.bf16.msra.mxu1 %v2326_v15 }
 0x4f8   : > { %v1307_v16 = vpop.f32.mrb[4].mxu1 }
 0x4f9   : > { %v2004_v17 = vpop.f32.mrb[5].mxu1  ;;  %v1359_v23 = vpack.c.bf16 %v1307_v16, %v1307_v16 }
 0x4fa   : > { %v1310_v18 = vpop.f32.mrb[6].mxu1 }
 0x4fb   : > { %v2005_v19 = vpop.f32.mrb[7].mxu1 }
 0x500   : > { %v1353_v20 = vpop.f32.mrb[8].mxu1 }
 0x501   : > { %v1360_v21 = vpack.c.bf16 %v1353_v20, %v1353_v20  ;;  %v2010_v22 = vpop.f32.mrb[9].mxu1 }
 0x502   : > { %v1356_v24 = vpop.f32.mrb[10].mxu1 }
 0x503   : > { %v2011_v25 = vpop.f32.mrb[11].mxu1  ;;  %1597 = vmatprep.mubr.bf16.mxu1 %v1360_v21 }
 0x504   : > { %1598 = vmatmul.mubr.bf16.vlgmr.msra.gmra.mrb[12].mxu1 %v1359_v23 }
 0x5d7   : > { %v1599_v30 = vpop.f32.mrb[12].mxu1 }
 0x5d8   : > { %v1600_v32 = vadd.f32 %v1599_v30, %v1398_v27  ;;  %v1601_v33 = vpop.f32.mrb[13].mxu1 }
 0x5d9   : > { %v1602_v34 = vadd.f32 %v1601_v33, %v1402_v28  ;;  %v1603_v36 = vpop.f32.mrb[14].mxu1 }
 0x5da   : > { %v1608_v37 = vadd.f32 %v1606_v29, %v1600_v32  ;;  %v1604_v38 = vpop.f32.mrb[15].mxu1 }
 0x5db   : > { %v1609_v39 = vadd.f32 %v1607_v31, %v1602_v34 }
 0x5dd   : > { %v1612_v41 = vadd.f32 %v1609_v39, %v1608_v37 }
 0x5df   : > { %1613 = vadd.xlane.f32.xlu0 %v1612_v41 }
 0x66c   : > { %v1614_v42 = vpop.xlane.xlu0 %1613 }
 0x66d   : > { %v1616_v43 = vmul.f32 0.00390625, %v1614_v42 }
 0x66f   : > { %v1617_v45 = vsub.f32 %v1608_v37, %v1616_v43  ;;  %v1618_v46 = vsub.f32 %v1609_v39, %v1616_v43 }
 0x671   : > { %v1619_v47 = vmul.f32 %v1617_v45, %v1617_v45  ;;  %v1620_v48 = vmul.f32 %v1618_v46, %v1618_v46 }
 0x673   : > { %v1621_v49 = vadd.f32 %v1620_v48, %v1619_v47 }
 0x675   : > { %1622 = vadd.xlane.f32.xlu1 %v1621_v49 }
 0x702   : > { %v1623_v50 = vpop.xlane.xlu1 %1622 }
 0x703   : > { %v1624_v44 = vmul.f32 0.00390625, %v1623_v50 }
 0x705   : > { %v1625_v51 = vadd.f32 1e-05, %v1624_v44 }
 0x707   : > { %2337 = vrsqrt.f32 %v1625_v51 }
 0x711   : > { %v2338_v35 = vpop.eup %2337 }
 0x712   : > { %v1627_v57 = vmul.f32 %v2338_v35, %v1617_v45  ;;  %v1628_v58 = vmul.f32 %v2338_v35, %v1618_v46 }
 0x714   : > { %v1640_v61 = vmul.f32 %v1633_v54, %v1627_v57  ;;  %v1641_v62 = vmul.f32 %v1637_v55, %v1628_v58 }
 0x716   : > { %v1653_v63 = vadd.f32 %v1646_v59, %v1640_v61  ;;  %v1654_v0 = vadd.f32 %v1650_v60, %v1641_v62 }
 0x718   : > { %v1978_v1 = vpack.c.bf16 %v1654_v0, %v1653_v63 }
 0x71a   : > { %1663 = vst [vmem:[%s413_s16] sm:$0xff] %v1978_v1 }
 0x71b   : > { %2578 = shalt.err (!%p2575_p4)
}
 0x71c   : > { %s2579_s24 = scalar_lea.hbm %s3054_s23, 128  ;;  %s2583_s2 = scalar_lea.hbm %s3106_s8, 256 }
 0x71d   : > { %p2580_p11 = scmp.ne.s32.totalorder %s3054_s23, %s2579_s24  ;;  %p2584_p9 = scmp.lt.u32.totalorder %s3054_s23, %s3106_s8 }
 0x71e   : > { %p2585_p7 = scmp.lt.u32.totalorder %s2583_s2, %s2579_s24  ;;  %p2587_p12 = scmp.lt.u32.totalorder %s2579_s24, %s3054_s23 }
 0x71f   : > { %p2581_p8 = pnand %p2580_p11, %p3131_p1 }
 0x720   : > { %p2586_p10 = por %p2585_p7, %p2584_p9 }
 0x721   : > { %p2582_p5 = pneg %p2581_p8 }
 0x722   : > { %p2588_p13 = por %p2587_p12, %p2586_p10 }
 0x724   : > { %p2589_p0 = pnand %p2588_p13, %p2582_p5 }
 0x726   : > { %2592 = shalt.err (!%p2589_p0)
}
 0x727   : > { %2042 = dma.vmem_to_hbm [thread:$0]  (%p3131_p1), %s3056_s18, 128, %s3054_s23, %s1665_s9  }
 0x728 PF: > { %s1691_s16 = sand.u32 1, %s2635_s27   ;;  %p3132_p2 = scmp.ne.s32.totalorder %s3120_s1, 0 }
 0x729   : > { %p3133_p3 = scmp.ge.s32.totalorder %s2647_s30, 2  ;;  %s1692_s22 = scalar_lea.sflag [#allocation4], %s1691_s16 }
 0x72b   : > { %p2071_p6 = pnand %p3133_p3, %p3132_p2 }
 0x72d   : > { %2630 = dma.done.wait (!%p2071_p6), %s1692_s22, 128  }
 0x72e   : > { %2632 = vsyncadd (!%p2071_p6), %s1692_s22, 4294967168  ;;  %p25_p4 = scmp.ge.s32.totalorder %s2906_s17, 4   ;;  %s3134_s27 = smov %s2639_s28 }
 0x72f   : > { %s3135_s28 = smov %s2643_s29  ;;  %s3136_s29 = smov %s2918_s13 }
 0x730   : > { %s3137_s30 = smov %s2906_s17  ;;  %27 = sbr.rel (!%p25_p4) target bundleno = 12 (0xc), region = 125 }
 0x737   :  { %1697 = vsyncpa [#allocation3], 1 }
 0x738   :  { %1699 = vsyncpa [#allocation3 + $0x1], 1 }
 0x739   :  { %1700 = vsyncpa [#allocation6], 1 }
 0x73a   :  { %1701 = vsyncpa [#allocation9], 1 }
 0x73b   :  { %1702 = vsyncpa [#allocation12], 1 }
 0x73c   :  { %1703 = vsyncpa [#allocation15], 1 }
 0x73d   :  { %1704 = vsyncpa [#allocation4], 1 }
 0x73e   :  { %1706 = vsyncpa [#allocation4 + $0x1], 1 }

</bundles_post_ra>
